<compile_context>
chip_gen: v5e
topology: v5e:2x2
jax: 0.10.0
libtpu: 0.0.40
codegen_flags: <defaults>
</compile_context>

<pallas_src>
import jax
import jax.numpy as jnp
from jax.experimental import pallas as pl
from jax.experimental.pallas import tpu as pltpu

_LANES = 128
_SUBLANES = 8


def _round_up(x, m):
    return ((x + m - 1) // m) * m


def _clip_boxes_kernel(boxes_ref, lo_ref, hi_ref, out_ref):
    # Pure VPU clamp: 1 vld + vmax + vmin + 1 vst per vreg.  Bounds are a
    # single (1, 128) row broadcast over the sublane/row axis of the block.
    out_ref[...] = jnp.minimum(
        jnp.maximum(boxes_ref[...], lo_ref[...]), hi_ref[...]
    )


def _clip_boxes_jnp(boxes, height, width):
    """Fused XLA clamp — used for tiny or lane-unaligned inputs (optimal 2-pass)."""
    dtype = boxes.dtype
    lo = jnp.asarray([0.0, 0.0, -jnp.inf, -jnp.inf], dtype=dtype)
    hi = jnp.asarray([jnp.inf, jnp.inf, width - 1, height - 1], dtype=dtype)
    return jnp.minimum(jnp.maximum(boxes, lo), hi)


def clip_boxes(boxes, img, *, max_tile_rows=4096, small_input_bytes=512 * 1024):
    """Pallas equivalent of ClipBoxes.forward(boxes, img).

    boxes: [B, N, 4] with (x1, y1, x2, y2) on the last axis (float dtype).
    img:   [B, C, H, W]; only its static H/W are used.
    """
    _, _, height, width = img.shape
    B, N, C = boxes.shape
    assert C == 4, "boxes must be [B, N, 4]"
    dtype = boxes.dtype
    total = B * N * C
    itemsize = jnp.dtype(dtype).itemsize

    # Fast path: tiny inputs (launch/pipeline prologue dominates) or sizes
    # where the lane-dense (rows, 128) view is impossible without a padding
    # copy.  The fused jnp clamp is the same 2-pass mem-bound cost as the
    # kernel, with zero extra traffic.
    if (total % _LANES != 0) or (total * itemsize < small_input_bytes):
        return _clip_boxes_jnp(boxes, height, width)

    # Per-lane clamp bounds.  The (x1, y1, x2, y2) pattern repeats every 4
    # lanes and 128 % 4 == 0, so one 128-wide row covers every block.
    # +/-inf on the unclamped side keeps torch.clamp semantics for inf inputs.
    # (For non-f32 dtypes the bounds round to that dtype, same as torch would.)
    lo = jnp.tile(
        jnp.asarray([0.0, 0.0, -jnp.inf, -jnp.inf], dtype=dtype), _LANES // 4
    ).reshape(1, _LANES)
    hi = jnp.tile(
        jnp.asarray([jnp.inf, jnp.inf, float(width - 1), float(height - 1)],
                    dtype=dtype),
        _LANES // 4,
    ).reshape(1, _LANES)

    # Zero-copy lane-dense view.
    rows = total // _LANES
    slab = boxes.reshape(rows, _LANES)

    # Tile sizing: blocks up to ~2 MiB (f32) to amortize per-step overhead,
    # but keep >= 2 grid steps whenever the slab can be split so both v7x
    # TensorCores get work and DMA writeback overlaps the next fetch.
    # rows per block stays a multiple of 8 (sublane tile); the last block may
    # be partial (Pallas pads reads / drops OOB writes).
    half_rows = _round_up(pl.cdiv(rows, 2), _SUBLANES)
    tile_m = max(_SUBLANES, min(max_tile_rows, half_rows))
    grid_m = pl.cdiv(rows, tile_m)

    out = pl.pallas_call(
        _clip_boxes_kernel,
        out_shape=jax.ShapeDtypeStruct((rows, _LANES), dtype),
        grid=(grid_m,),
        in_specs=[
            pl.BlockSpec((tile_m, _LANES), lambda i: (i, 0)),
            pl.BlockSpec((1, _LANES), lambda i: (0, 0)),
            pl.BlockSpec((1, _LANES), lambda i: (0, 0)),
        ],
        out_specs=pl.BlockSpec((tile_m, _LANES), lambda i: (i, 0)),
        compiler_params=pltpu.CompilerParams(
            dimension_semantics=("parallel",)
        ),
        cost_estimate=pl.CostEstimate(
            flops=2 * total,
            transcendentals=0,
            bytes_accessed=2 * total * itemsize,
        ),
    )(slab, lo, hi)

    return out.reshape(B, N, C)


if __name__ == "__main__":
    key = jax.random.PRNGKey(0)
    k1, k2, k3, kimg = jax.random.split(key, 4)

    B, Cimg, H, W = 2, 4, 16, 16
    img = jax.random.normal(kimg, (B, Cimg, H, W), dtype=jnp.float32)

    def reference(bx):
        x1 = jnp.maximum(bx[..., 0], 0.0)
        y1 = jnp.maximum(bx[..., 1], 0.0)
        x2 = jnp.minimum(bx[..., 2], float(W - 1))
        y2 = jnp.minimum(bx[..., 3], float(H - 1))
        return jnp.stack([x1, y1, x2, y2], axis=-1)

    # Case 1: aligned + large enough for the Pallas path (2 MiB slab,
    # 2 pipelined grid steps of ~1 MiB each).
    N1 = 65536
    boxes1 = jax.random.uniform(
        k1, (B, N1, 4), dtype=jnp.float32, minval=-8.0, maxval=24.0
    )
    out1 = jax.block_until_ready(clip_boxes(boxes1, img))
    assert out1.shape == boxes1.shape
    assert jnp.allclose(out1, reference(boxes1)), "mismatch vs reference (1)"

    # Case 2: rows (157) not a multiple of the tile -> exercises the partial
    # last grid block inside the kernel (force the kernel path).
    N2 = 2512  # B*N2*4 = 20096 = 157 * 128
    boxes2 = jax.random.uniform(
        k2, (B, N2, 4), dtype=jnp.float32, minval=-8.0, maxval=24.0
    )
    out2 = jax.block_until_ready(clip_boxes(boxes2, img, small_input_bytes=0))
    assert out2.shape == boxes2.shape
    assert jnp.allclose(out2, reference(boxes2)), "mismatch vs reference (2)"

    # Case 3: ragged (B*N*4 % 128 != 0) and tiny -> fused jnp fast path.
    N3 = 1000
    boxes3 = jax.random.uniform(
        k3, (B, N3, 4), dtype=jnp.float32, minval=-8.0, maxval=24.0
    )
    out3 = jax.block_until_ready(clip_boxes(boxes3, img))
    assert out3.shape == boxes3.shape
    assert jnp.allclose(out3, reference(boxes3)), "mismatch vs reference (3)"

    print("KERNEL_OK")
</pallas_src>

<mosaic_0001>
module attributes {stable_mosaic.version = 11 : i64} {
  func.func @_clip_boxes_kernel(%arg0: i32, %arg1: memref<2048x128xf32, #tpu.memory_space<vmem>>, %arg2: memref<1x128xf32, #tpu.memory_space<vmem>>, %arg3: memref<1x128xf32, #tpu.memory_space<vmem>>, %arg4: memref<2048x128xf32, #tpu.memory_space<vmem>>) attributes {dimension_semantics = [#tpu.dimension_semantics<parallel>], iteration_bounds = array<i64: 2>, scalar_prefetch = 0 : i64, scratch_operands = 0 : i64, tpu.core_type = #tpu.core_type<tc>, window_params = [{transform_indices = @transform_0, window_bounds = array<i64: 2048, 128>}, {pipeline_mode = #tpu.pipeline_mode<synchronous>, transform_indices = @transform_1, window_bounds = array<i64: 1, 128>}, {pipeline_mode = #tpu.pipeline_mode<synchronous>, transform_indices = @transform_2, window_bounds = array<i64: 1, 128>}, {transform_indices = @transform_3, window_bounds = array<i64: 2048, 128>}]} {
    %c0 = arith.constant 0 : index
    %c0_0 = arith.constant 0 : index
    %0 = vector.load %arg1[%c0, %c0_0] : memref<2048x128xf32, #tpu.memory_space<vmem>>, vector<2048x128xf32>
    %c0_1 = arith.constant 0 : index
    %c0_2 = arith.constant 0 : index
    %1 = vector.load %arg2[%c0_1, %c0_2] : memref<1x128xf32, #tpu.memory_space<vmem>>, vector<1x128xf32>
    %2 = vector.broadcast %1 : vector<1x128xf32> to vector<2048x128xf32>
    %3 = arith.maximumf %0, %2 : vector<2048x128xf32>
    %c0_3 = arith.constant 0 : index
    %c0_4 = arith.constant 0 : index
    %4 = vector.load %arg3[%c0_3, %c0_4] : memref<1x128xf32, #tpu.memory_space<vmem>>, vector<1x128xf32>
    %5 = vector.broadcast %4 : vector<1x128xf32> to vector<2048x128xf32>
    %6 = arith.minimumf %3, %5 : vector<2048x128xf32>
    %c0_5 = arith.constant 0 : index
    %c0_6 = arith.constant 0 : index
    %7 = vector.load %arg4[%c0_5, %c0_6] : memref<2048x128xf32, #tpu.memory_space<vmem>>, vector<2048x128xf32>
    tpu.vector_store %arg4[%c0_5, %c0_6], %6 {strides = array<i32>} : memref<2048x128xf32, #tpu.memory_space<vmem>>, vector<2048x128xf32>,
    return
  }
  func.func @transform_0(%arg0: i32) -> (i32, i32) {
    %c0_i32 = arith.constant 0 : i32
    %c0_i32_0 = arith.constant 0 : i32
    return %arg0, %c0_i32 : i32, i32
  }
  func.func @transform_1(%arg0: i32) -> (i32, i32) {
    %c0_i32 = arith.constant 0 : i32
    %c0_i32_0 = arith.constant 0 : i32
    %c0_i32_1 = arith.constant 0 : i32
    return %c0_i32, %c0_i32_0 : i32, i32
  }
  func.func @transform_2(%arg0: i32) -> (i32, i32) {
    %c0_i32 = arith.constant 0 : i32
    %c0_i32_0 = arith.constant 0 : i32
    %c0_i32_1 = arith.constant 0 : i32
    return %c0_i32, %c0_i32_0 : i32, i32
  }
  func.func @transform_3(%arg0: i32) -> (i32, i32) {
    %c0_i32 = arith.constant 0 : i32
    %c0_i32_0 = arith.constant 0 : i32
    return %arg0, %c0_i32 : i32, i32
  }
}

</mosaic_0001>

<bundles_post_ra>
// kernel: tpu_custom_call.1
= control target key start
LH: loop header
LB: loop body
LE: loop exit
PB: predicated region body
PF: predicated region fallthrough
CT: control target
= control target key end

     0   :  { %8 = vsyncpa [#allocation3], 0  ;;  %s2831_s0 = inlined_call_operand.hbm [shape: f32[4096,128], index: 0, kind: input, shape index: {}]   ;;  %s2832_s1 = inlined_call_operand.hbm [shape: f32[1,128], index: 1, kind: input, shape index: {}]   ;;  %s2833_s2 = inlined_call_operand.hbm [shape: f32[1,128], index: 2, kind: input, shape index: {}]   ;;  %s2834_s3 = inlined_call_operand.hbm [shape: f32[4096,128], index: 3, kind: output, shape index: {}]  }
   0x1   :  { %10 = vsyncpa [#allocation3 + $0x1], 0 }
   0x2   :  { %11 = vsyncpa [#allocation6], 0 }
   0x3   :  { %12 = vsyncpa [#allocation4], 0 }
   0x4   :  { %14 = vsyncpa [#allocation4 + $0x1], 0  ;;  %s1645_s12 = smov 0   ;;  %s1647_s13 = smov 0  }
   0x5   :  { %s1649_s14 = smov 0   ;;  %s1651_s15 = smov 0  }
   0x6 LB: > { %s1666_s16 = sadd.s32 4294967295, %s1617_s15   ;;  %s1362_s17 = sadd.s32 4294967294, %s1617_s15   ;;  %s1617_s15 = sphi %s1651_s15, %s2845_s15   ;;  %s1613_s14 = sphi %s1649_s14, %s2844_s14   ;;  %s1609_s13 = sphi %s1647_s13, %s2843_s13   ;;  %s1605_s12 = sphi %s1645_s12, %s2842_s12  }
   0x7   : > { %s1670_s18 = sadd.s32 1, %s1617_s15   ;;  %s27_s19 = sadd.s32 1, %s1613_s14 }
   0x8   : > { %s24_s20 = ssub.s32 %s1617_s15, %s1670_s18  ;;  %p34_p0 = scmp.ne.s32.totalorder %s1613_s14, %s1609_s13 }
   0x9   : > { %p25_p1 = scmp.eq.s32.totalorder %s24_s20, 0  ;;  %p35_p2 = scmp.eq.s32.totalorder %s1617_s15, 0 }
   0xa   : > { %p40_p3 = scmp.ne.s32.totalorder %s1609_s13, %s1605_s12  ;;  %p41_p4 = scmp.eq.s32.totalorder %s1666_s16, 0 }
   0xb   : > { %s1682_s21 = scalar_select %p25_p1, %s1613_s14, %s27_s19  }
   0xc   : > { %p1684_p5 = por %p35_p2, %p34_p0  ;;  %p1690_p6 = por %p41_p4, %p40_p3 }
   0xd   : > { %p106_p7 = scmp.eq.s32.totalorder %s1666_s16, 1  ;;  %p112_p8 = scmp.eq.s32.totalorder %s1362_s17, 1 }
   0xe   : > { %p1363_p9 = scmp.ge.s32.totalorder %s1617_s15, 1  ;;  %p119_p10 = scmp.lt.s32.totalorder %s1617_s15, 3 }
   0xf   : > { %p1697_p11 = por %p106_p7, %p34_p0  ;;  %p1701_p12 = por %p112_p8, %p40_p3 }
  0x10   : > { %p1705_p13 = pnand %p1363_p9, %p119_p10  ;;  %s131_s29 = sshll.u32 %s2832_s1, 4  ;;  %s132_s29 = int_to_ptr.hbm [resolvable:$true] %s131_s29 }
  0x11   : > { %s1619_s30 = smov [#allocation5]   ;;  %p1411_p3 = scmp.lt.s32.totalorder %s1617_s15, 2 }
  0x12   : > { %p1394_p1 = pneg %p1705_p13  ;;  %s133_s4 = sshll.u32 %s1619_s30, 4  ;;  %s134_s4 = int_to_ptr.vmem [resolvable:$true] %s133_s4 }
  0x13   : > { %s143_s7 = sshll.u32 %s2833_s2, 4  ;;  %p1723_p7 = pnand %p1411_p3, %p1684_p5  ;;  %s144_s7 = int_to_ptr.hbm [resolvable:$true] %s143_s7 }
  0x14   : > { %p1395_p2 = pnand %p1394_p1, %p41_p4  ;;  %s1620_s9 = smov [#allocation7]  }
  0x15   : > { %s145_s10 = sshll.u32 %s1620_s9, 4  ;;  %s156_s11 = sand.u32 1, %s1613_s14   ;;  %s146_s10 = int_to_ptr.vmem [resolvable:$true] %s145_s10 }
  0x16   : > { %1397 = dma.hbm_to_vmem [thread:$0]  (!%p1395_p2), %s132_s29, 16, %s134_s4, [#allocation6]  }
  0x17   : > { %1400 = dma.hbm_to_vmem [thread:$0]  (!%p1395_p2), %s144_s7, 16, %s146_s10, [#allocation6]  }
  0x18   : > { %s1367_s17 = sshll.u32 %s156_s11, 11  ;;  %s1380_s19 = sshll.u32 %s1617_s15, 11 }
  0x19   : > { %s165_s28 = scalar_lea.hbm %s2831_s0, %s1380_s19  ;;  %s160_s30 = scalar_lea.vmem [#allocation2], %s1367_s17 }
  0x1a   : > { %s168_s5 = sshll.u32 %s160_s30, 4  ;;  %s166_s29 = sshll.u32 %s165_s28, 4  ;;  %s169_s5 = int_to_ptr.vmem [resolvable:$true] %s168_s5  ;;  %s167_s29 = int_to_ptr.hbm [resolvable:$true] %s166_s29 }
  0x1b   : > { %s157_s22 = scalar_lea.sflag [#allocation3], %s156_s11  ;;  %s1517_s4 = sshra.s32 %s167_s29, 4  ;;  %s1518_s4 = int_to_ptr.hbm [resolvable:$true] %s1517_s4 }
  0x1c   : > { %s1519_s6 = scalar_lea.hbm %s1518_s4, 2048  ;;  %p1521_p8 = pneg %p1723_p7 }
  0x1d   : > { %p1520_p5 = scmp.ne.s32.totalorder %s1518_s4, %s1519_s6  ;;  %s1524_s10 = scalar_lea.hbm %s2831_s0, 4096 }
  0x1e   : > { %p1525_p1 = scmp.lt.s32.totalorder %s1518_s4, %s2831_s0  ;;  %p1526_p2 = scmp.lt.s32.totalorder %s1524_s10, %s1519_s6 }
  0x1f   : > { %p1522_p9 = pnand %p1521_p8, %p1520_p5 }
  0x20   : > { %p1527_p3 = por %p1526_p2, %p1525_p1 }
  0x21   : > { %p1523_p10 = pneg %p1522_p9 }
  0x23   : > { %p1528_p0 = pnand %p1527_p3, %p1523_p10 }
  0x25   : > { %1531 = shalt.err (!%p1528_p0)
}
  0x26   : > { %s1621_s11 = smov 128   ;;  %s1622_s17 = smov 8  }
  0x27   : > { %1404 = dma.hbm_to_vmem [thread:$0]  (!%p1723_p7), %s167_s29, 32768, %s169_s5, %s157_s22, %s1621_s11, %s1621_s11, %s1622_s17  }
  0x28   : > { %180 = sbr.rel (%p1705_p13) target bundleno = 313 (0x139), region = 32  ;;  %s1745_s27 = sand.u32 (!%p1705_p13), 1, %s1609_s13  }
  0x29   : > { %s1371_s28 = sshll.u32 (!%p1705_p13), %s1745_s27, 11  ;;  %s183_s30 = scalar_lea.sflag (!%p1705_p13), [#allocation3], %s1745_s27 }
  0x2a   : > { %s1751_s4 = scalar_lea.vmem (!%p1705_p13), [#allocation2], %s1371_s28 }
  0x2d   : > { %1592 = dma.done.wait (%p1690_p6), %s183_s30, 32768  }
  0x2e   : > { %1594 = vsyncadd (%p1690_p6), %s183_s30, 4294934528 }
  0x2f   : > { %1596 = dma.done.wait (%p41_p4), [#allocation6], 32  }
  0x30   : > { %1598 = vsyncadd (%p41_p4), [#allocation6], 4294967264  ;;  %v222_v0 = vld [vmem:[%s1751_s4] sm:$0xff]  ;;  %v223_v3 = vld [vmem:[%s1751_s4 + $0x8] sm:$0xff]  ;;  %s1790_s23 = scalar_lea.vmem [#allocation8], %s1371_s28  ;;  %s1381_s26 = sshll.u32 %s1666_s16, 11 }
  0x31   : > { %v1762_v1 = vld [vmem:[#allocation5] ss:$0 sm:$0xff]  ;;  %v1764_v2 = vld [vmem:[#allocation7] ss:$0 sm:$0xff]  ;;  %v224_v6 = vld [vmem:[%s1751_s4 + $0x10] sm:$0xff]  ;;  %s1266_s5 = scalar_lea.hbm %s2834_s3, %s1381_s26  ;;  %s1267_s29 = sshll.u32 %s1790_s23, 4  ;;  %s1268_s29 = int_to_ptr.vmem [resolvable:$true] %s1267_s29 }
  0x32   : > { %v482_v4 = vmax.f32 %v222_v0, %v1762_v1  ;;  %v483_v5 = vmax.f32 %v223_v3, %v1762_v1  ;;  %v225_v7 = vld [vmem:[%s1751_s4 + $0x18] sm:$0xff]  ;;  %v226_v8 = vld [vmem:[%s1751_s4 + $0x20] sm:$0xff]  ;;  %v484_v9 = vmax.f32 %v224_v6, %v1762_v1  ;;  %v227_v12 = vld [vmem:[%s1751_s4 + $0x28] sm:$0xff]  ;;  %s1269_s22 = sshll.u32 %s1266_s5, 4  ;;  %s1255_s6 = scalar_lea.sflag [#allocation4], %s1745_s27  ;;  %s1270_s22 = int_to_ptr.hbm [resolvable:$true] %s1269_s22 }
  0x33   : > { %v485_v10 = vmax.f32 %v225_v7, %v1762_v1  ;;  %v486_v11 = vmax.f32 %v226_v8, %v1762_v1  ;;  %v228_v13 = vld [vmem:[%s1751_s4 + $0x30] sm:$0xff]  ;;  %v229_v14 = vld [vmem:[%s1751_s4 + $0x38] sm:$0xff]  ;;  %v487_v17 = vmax.f32 %v227_v12, %v1762_v1  ;;  %v230_v19 = vld [vmem:[%s1751_s4 + $0x40] sm:$0xff]  ;;  %s1561_s7 = sshra.s32 %s1270_s22, 4  ;;  %s1567_s19 = scalar_lea.hbm %s2834_s3, 4096  ;;  %s1562_s7 = int_to_ptr.hbm [resolvable:$true] %s1561_s7 }
  0x34   : > { %v742_v15 = vmin.f32 %v482_v4, %v1764_v2  ;;  %v743_v16 = vmin.f32 %v483_v5, %v1764_v2  ;;  %v488_v18 = vmax.f32 %v228_v13, %v1762_v1  ;;  %v231_v20 = vld [vmem:[%s1751_s4 + $0x48] sm:$0xff]  ;;  %v744_v21 = vmin.f32 %v484_v9, %v1764_v2  ;;  %v232_v24 = vld [vmem:[%s1751_s4 + $0x50] sm:$0xff]  ;;  %v233_v27 = vld [vmem:[%s1751_s4 + $0x58] sm:$0xff]  ;;  %s1563_s9 = scalar_lea.hbm %s1562_s7, 2048  ;;  %p1568_p0 = scmp.lt.s32.totalorder %s1562_s7, %s2834_s3 }
  0x35   : > { %v745_v22 = vmin.f32 %v485_v10, %v1764_v2  ;;  %v489_v23 = vmax.f32 %v229_v14, %v1762_v1  ;;  %v746_v25 = vmin.f32 %v486_v11, %v1764_v2  ;;  %v490_v26 = vmax.f32 %v230_v19, %v1762_v1  ;;  %v234_v30 = vld [vmem:[%s1751_s4 + $0x60] sm:$0xff]  ;;  %v235_v33 = vld [vmem:[%s1751_s4 + $0x68] sm:$0xff]  ;;  %v236_v36 = vld [vmem:[%s1751_s4 + $0x70] sm:$0xff]  ;;  %p1564_p4 = scmp.ne.s32.totalorder %s1562_s7, %s1563_s9  ;;  %p1569_p7 = scmp.lt.s32.totalorder %s1567_s19, %s1563_s9 }
  0x36   : > { %998 = vst [vmem:[%s1790_s23] sm:$0xff] %v742_v15  ;;  %v747_v28 = vmin.f32 %v487_v17, %v1764_v2  ;;  %v491_v29 = vmax.f32 %v231_v20, %v1762_v1  ;;  %v748_v31 = vmin.f32 %v488_v18, %v1764_v2  ;;  %v492_v32 = vmax.f32 %v232_v24, %v1762_v1  ;;  %v237_v39 = vld [vmem:[%s1751_s4 + $0x78] sm:$0xff]  ;;  %v238_v42 = vld [vmem:[%s1751_s4 + $0x80] sm:$0xff]  ;;  %v239_v45 = vld [vmem:[%s1751_s4 + $0x88] sm:$0xff] }
  0x37   : > { %999 = vst [vmem:[%s1790_s23 + $0x8] sm:$0xff] %v743_v16  ;;  %v749_v34 = vmin.f32 %v489_v23, %v1764_v2  ;;  %v493_v35 = vmax.f32 %v233_v27, %v1762_v1  ;;  %v750_v37 = vmin.f32 %v490_v26, %v1764_v2  ;;  %v494_v38 = vmax.f32 %v234_v30, %v1762_v1  ;;  %v240_v48 = vld [vmem:[%s1751_s4 + $0x90] sm:$0xff]  ;;  %v241_v51 = vld [vmem:[%s1751_s4 + $0x98] sm:$0xff]  ;;  %v242_v54 = vld [vmem:[%s1751_s4 + $0xa0] sm:$0xff]  ;;  %p1565_p6 = pnand %p1564_p4, %p1697_p11  ;;  %p1570_p5 = por %p1569_p7, %p1568_p0 }
  0x38   : > { %1000 = vst [vmem:[%s1790_s23 + $0x10] sm:$0xff] %v744_v21  ;;  %v751_v40 = vmin.f32 %v491_v29, %v1764_v2  ;;  %v495_v41 = vmax.f32 %v235_v33, %v1762_v1  ;;  %v752_v43 = vmin.f32 %v492_v32, %v1764_v2  ;;  %v496_v44 = vmax.f32 %v236_v36, %v1762_v1  ;;  %v243_v57 = vld [vmem:[%s1751_s4 + $0xa8] sm:$0xff]  ;;  %v244_v60 = vld [vmem:[%s1751_s4 + $0xb0] sm:$0xff]  ;;  %v245_v63 = vld [vmem:[%s1751_s4 + $0xb8] sm:$0xff] }
  0x39   : > { %1001 = vst [vmem:[%s1790_s23 + $0x18] sm:$0xff] %v745_v22  ;;  %v753_v46 = vmin.f32 %v493_v35, %v1764_v2  ;;  %v497_v47 = vmax.f32 %v237_v39, %v1762_v1  ;;  %v754_v49 = vmin.f32 %v494_v38, %v1764_v2  ;;  %v498_v50 = vmax.f32 %v238_v42, %v1762_v1  ;;  %v246_v4 = vld [vmem:[%s1751_s4 + $0xc0] sm:$0xff]  ;;  %v247_v7 = vld [vmem:[%s1751_s4 + $0xc8] sm:$0xff]  ;;  %v248_v10 = vld [vmem:[%s1751_s4 + $0xd0] sm:$0xff]  ;;  %p1566_p13 = pneg %p1565_p6 }
  0x3a   : > { %1002 = vst [vmem:[%s1790_s23 + $0x20] sm:$0xff] %v746_v25  ;;  %v755_v52 = vmin.f32 %v495_v41, %v1764_v2  ;;  %v499_v53 = vmax.f32 %v239_v45, %v1762_v1  ;;  %v756_v55 = vmin.f32 %v496_v44, %v1764_v2  ;;  %v500_v56 = vmax.f32 %v240_v48, %v1762_v1  ;;  %v249_v13 = vld [vmem:[%s1751_s4 + $0xd8] sm:$0xff]  ;;  %v250_v16 = vld [vmem:[%s1751_s4 + $0xe0] sm:$0xff]  ;;  %v251_v19 = vld [vmem:[%s1751_s4 + $0xe8] sm:$0xff] }
  0x3b   : > { %1003 = vst [vmem:[%s1790_s23 + $0x28] sm:$0xff] %v747_v28  ;;  %v757_v58 = vmin.f32 %v497_v47, %v1764_v2  ;;  %v501_v59 = vmax.f32 %v241_v51, %v1762_v1  ;;  %v758_v61 = vmin.f32 %v498_v50, %v1764_v2  ;;  %v502_v62 = vmax.f32 %v242_v54, %v1762_v1  ;;  %v252_v22 = vld [vmem:[%s1751_s4 + $0xf0] sm:$0xff]  ;;  %v253_v25 = vld [vmem:[%s1751_s4 + $0xf8] sm:$0xff]  ;;  %v254_v28 = vld [vmem:[%s1751_s4 + $0x100] sm:$0xff]  ;;  %p1571_p8 = pnand %p1570_p5, %p1566_p13 }
  0x3c   : > { %1004 = vst [vmem:[%s1790_s23 + $0x30] sm:$0xff] %v748_v31  ;;  %v759_v0 = vmin.f32 %v499_v53, %v1764_v2  ;;  %v503_v3 = vmax.f32 %v243_v57, %v1762_v1  ;;  %v760_v5 = vmin.f32 %v500_v56, %v1764_v2  ;;  %v504_v6 = vmax.f32 %v244_v60, %v1762_v1  ;;  %v255_v31 = vld [vmem:[%s1751_s4 + $0x108] sm:$0xff] }
  0x3d   : > { %1005 = vst [vmem:[%s1790_s23 + $0x38] sm:$0xff] %v749_v34  ;;  %v761_v8 = vmin.f32 %v501_v59, %v1764_v2  ;;  %v505_v9 = vmax.f32 %v245_v63, %v1762_v1  ;;  %v762_v11 = vmin.f32 %v502_v62, %v1764_v2  ;;  %v506_v12 = vmax.f32 %v246_v4, %v1762_v1  ;;  %v256_v34 = vld [vmem:[%s1751_s4 + $0x110] sm:$0xff] }
  0x3e   : > { %1006 = vst [vmem:[%s1790_s23 + $0x40] sm:$0xff] %v750_v37  ;;  %v763_v14 = vmin.f32 %v503_v3, %v1764_v2  ;;  %v507_v15 = vmax.f32 %v247_v7, %v1762_v1  ;;  %v764_v17 = vmin.f32 %v504_v6, %v1764_v2  ;;  %v508_v18 = vmax.f32 %v248_v10, %v1762_v1  ;;  %v257_v37 = vld [vmem:[%s1751_s4 + $0x118] sm:$0xff] }
  0x3f   : > { %1007 = vst [vmem:[%s1790_s23 + $0x48] sm:$0xff] %v751_v40  ;;  %v765_v20 = vmin.f32 %v505_v9, %v1764_v2  ;;  %v509_v21 = vmax.f32 %v249_v13, %v1762_v1  ;;  %v766_v23 = vmin.f32 %v506_v12, %v1764_v2  ;;  %v510_v24 = vmax.f32 %v250_v16, %v1762_v1  ;;  %v258_v40 = vld [vmem:[%s1751_s4 + $0x120] sm:$0xff] }
  0x40   : > { %1008 = vst [vmem:[%s1790_s23 + $0x50] sm:$0xff] %v752_v43  ;;  %v767_v26 = vmin.f32 %v507_v15, %v1764_v2  ;;  %v511_v27 = vmax.f32 %v251_v19, %v1762_v1  ;;  %v768_v29 = vmin.f32 %v508_v18, %v1764_v2  ;;  %v512_v30 = vmax.f32 %v252_v22, %v1762_v1  ;;  %v259_v43 = vld [vmem:[%s1751_s4 + $0x128] sm:$0xff] }
  0x41   : > { %1009 = vst [vmem:[%s1790_s23 + $0x58] sm:$0xff] %v753_v46  ;;  %v769_v32 = vmin.f32 %v509_v21, %v1764_v2  ;;  %v513_v33 = vmax.f32 %v253_v25, %v1762_v1  ;;  %v770_v35 = vmin.f32 %v510_v24, %v1764_v2  ;;  %v514_v36 = vmax.f32 %v254_v28, %v1762_v1  ;;  %v260_v46 = vld [vmem:[%s1751_s4 + $0x130] sm:$0xff] }
  0x42   : > { %1010 = vst [vmem:[%s1790_s23 + $0x60] sm:$0xff] %v754_v49  ;;  %v771_v38 = vmin.f32 %v511_v27, %v1764_v2  ;;  %v515_v39 = vmax.f32 %v255_v31, %v1762_v1  ;;  %v772_v41 = vmin.f32 %v512_v30, %v1764_v2  ;;  %v516_v42 = vmax.f32 %v256_v34, %v1762_v1  ;;  %v261_v49 = vld [vmem:[%s1751_s4 + $0x138] sm:$0xff] }
  0x43   : > { %1011 = vst [vmem:[%s1790_s23 + $0x68] sm:$0xff] %v755_v52  ;;  %v773_v44 = vmin.f32 %v513_v33, %v1764_v2  ;;  %v517_v45 = vmax.f32 %v257_v37, %v1762_v1  ;;  %v774_v47 = vmin.f32 %v514_v36, %v1764_v2  ;;  %v518_v48 = vmax.f32 %v258_v40, %v1762_v1  ;;  %v262_v52 = vld [vmem:[%s1751_s4 + $0x140] sm:$0xff] }
  0x44   : > { %1012 = vst [vmem:[%s1790_s23 + $0x70] sm:$0xff] %v756_v55  ;;  %v775_v50 = vmin.f32 %v515_v39, %v1764_v2  ;;  %v519_v51 = vmax.f32 %v259_v43, %v1762_v1  ;;  %v776_v53 = vmin.f32 %v516_v42, %v1764_v2  ;;  %v520_v54 = vmax.f32 %v260_v46, %v1762_v1  ;;  %v263_v55 = vld [vmem:[%s1751_s4 + $0x148] sm:$0xff] }
  0x45   : > { %1013 = vst [vmem:[%s1790_s23 + $0x78] sm:$0xff] %v757_v58  ;;  %v777_v56 = vmin.f32 %v517_v45, %v1764_v2  ;;  %v521_v57 = vmax.f32 %v261_v49, %v1762_v1  ;;  %v264_v58 = vld [vmem:[%s1751_s4 + $0x150] sm:$0xff]  ;;  %v778_v59 = vmin.f32 %v518_v48, %v1764_v2  ;;  %v522_v60 = vmax.f32 %v262_v52, %v1762_v1 }
  0x46   : > { %1014 = vst [vmem:[%s1790_s23 + $0x80] sm:$0xff] %v758_v61  ;;  %v265_v61 = vld [vmem:[%s1751_s4 + $0x158] sm:$0xff]  ;;  %v779_v62 = vmin.f32 %v519_v51, %v1764_v2  ;;  %v523_v63 = vmax.f32 %v263_v55, %v1762_v1  ;;  %v780_v3 = vmin.f32 %v520_v54, %v1764_v2  ;;  %v524_v4 = vmax.f32 %v264_v58, %v1762_v1 }
  0x47   : > { %1015 = vst [vmem:[%s1790_s23 + $0x88] sm:$0xff] %v759_v0  ;;  %v266_v0 = vld [vmem:[%s1751_s4 + $0x160] sm:$0xff]  ;;  %v781_v6 = vmin.f32 %v521_v57, %v1764_v2  ;;  %v525_v7 = vmax.f32 %v265_v61, %v1762_v1  ;;  %v782_v9 = vmin.f32 %v522_v60, %v1764_v2 }
  0x48   : > { %1016 = vst [vmem:[%s1790_s23 + $0x90] sm:$0xff] %v760_v5  ;;  %v267_v5 = vld [vmem:[%s1751_s4 + $0x168] sm:$0xff]  ;;  %v526_v10 = vmax.f32 %v266_v0, %v1762_v1  ;;  %v783_v12 = vmin.f32 %v523_v63, %v1764_v2  ;;  %v784_v15 = vmin.f32 %v524_v4, %v1764_v2 }
  0x49   : > { %1017 = vst [vmem:[%s1790_s23 + $0x98] sm:$0xff] %v761_v8  ;;  %v268_v8 = vld [vmem:[%s1751_s4 + $0x170] sm:$0xff]  ;;  %v527_v13 = vmax.f32 %v267_v5, %v1762_v1  ;;  %v785_v18 = vmin.f32 %v525_v7, %v1764_v2 }
  0x4a   : > { %1018 = vst [vmem:[%s1790_s23 + $0xa0] sm:$0xff] %v762_v11  ;;  %v269_v11 = vld [vmem:[%s1751_s4 + $0x178] sm:$0xff]  ;;  %v528_v16 = vmax.f32 %v268_v8, %v1762_v1  ;;  %v786_v21 = vmin.f32 %v526_v10, %v1764_v2 }
  0x4b   : > { %1019 = vst [vmem:[%s1790_s23 + $0xa8] sm:$0xff] %v763_v14  ;;  %v270_v14 = vld [vmem:[%s1751_s4 + $0x180] sm:$0xff]  ;;  %v529_v19 = vmax.f32 %v269_v11, %v1762_v1  ;;  %v787_v24 = vmin.f32 %v527_v13, %v1764_v2 }
  0x4c   : > { %1020 = vst [vmem:[%s1790_s23 + $0xb0] sm:$0xff] %v764_v17  ;;  %v271_v17 = vld [vmem:[%s1751_s4 + $0x188] sm:$0xff]  ;;  %v530_v22 = vmax.f32 %v270_v14, %v1762_v1  ;;  %v788_v27 = vmin.f32 %v528_v16, %v1764_v2 }
  0x4d   : > { %1021 = vst [vmem:[%s1790_s23 + $0xb8] sm:$0xff] %v765_v20  ;;  %v272_v20 = vld [vmem:[%s1751_s4 + $0x190] sm:$0xff]  ;;  %v531_v25 = vmax.f32 %v271_v17, %v1762_v1  ;;  %v789_v30 = vmin.f32 %v529_v19, %v1764_v2 }
  0x4e   : > { %1022 = vst [vmem:[%s1790_s23 + $0xc0] sm:$0xff] %v766_v23  ;;  %v273_v23 = vld [vmem:[%s1751_s4 + $0x198] sm:$0xff]  ;;  %v532_v28 = vmax.f32 %v272_v20, %v1762_v1  ;;  %v790_v33 = vmin.f32 %v530_v22, %v1764_v2 }
  0x4f   : > { %1023 = vst [vmem:[%s1790_s23 + $0xc8] sm:$0xff] %v767_v26  ;;  %v274_v26 = vld [vmem:[%s1751_s4 + $0x1a0] sm:$0xff]  ;;  %v533_v31 = vmax.f32 %v273_v23, %v1762_v1  ;;  %v791_v36 = vmin.f32 %v531_v25, %v1764_v2 }
  0x50   : > { %1024 = vst [vmem:[%s1790_s23 + $0xd0] sm:$0xff] %v768_v29  ;;  %v275_v29 = vld [vmem:[%s1751_s4 + $0x1a8] sm:$0xff]  ;;  %v534_v34 = vmax.f32 %v274_v26, %v1762_v1  ;;  %v792_v39 = vmin.f32 %v532_v28, %v1764_v2 }
  0x51   : > { %1025 = vst [vmem:[%s1790_s23 + $0xd8] sm:$0xff] %v769_v32  ;;  %v276_v32 = vld [vmem:[%s1751_s4 + $0x1b0] sm:$0xff]  ;;  %v535_v37 = vmax.f32 %v275_v29, %v1762_v1  ;;  %v793_v42 = vmin.f32 %v533_v31, %v1764_v2 }
  0x52   : > { %1026 = vst [vmem:[%s1790_s23 + $0xe0] sm:$0xff] %v770_v35  ;;  %v277_v35 = vld [vmem:[%s1751_s4 + $0x1b8] sm:$0xff]  ;;  %v536_v40 = vmax.f32 %v276_v32, %v1762_v1  ;;  %v794_v45 = vmin.f32 %v534_v34, %v1764_v2 }
  0x53   : > { %1027 = vst [vmem:[%s1790_s23 + $0xe8] sm:$0xff] %v771_v38  ;;  %v278_v38 = vld [vmem:[%s1751_s4 + $0x1c0] sm:$0xff]  ;;  %v537_v43 = vmax.f32 %v277_v35, %v1762_v1  ;;  %v795_v48 = vmin.f32 %v535_v37, %v1764_v2 }
  0x54   : > { %1028 = vst [vmem:[%s1790_s23 + $0xf0] sm:$0xff] %v772_v41  ;;  %v279_v41 = vld [vmem:[%s1751_s4 + $0x1c8] sm:$0xff]  ;;  %v538_v46 = vmax.f32 %v278_v38, %v1762_v1  ;;  %v796_v51 = vmin.f32 %v536_v40, %v1764_v2 }
  0x55   : > { %1029 = vst [vmem:[%s1790_s23 + $0xf8] sm:$0xff] %v773_v44  ;;  %v280_v44 = vld [vmem:[%s1751_s4 + $0x1d0] sm:$0xff]  ;;  %v539_v49 = vmax.f32 %v279_v41, %v1762_v1  ;;  %v797_v54 = vmin.f32 %v537_v43, %v1764_v2 }
  0x56   : > { %1030 = vst [vmem:[%s1790_s23 + $0x100] sm:$0xff] %v774_v47  ;;  %v281_v47 = vld [vmem:[%s1751_s4 + $0x1d8] sm:$0xff]  ;;  %v540_v52 = vmax.f32 %v280_v44, %v1762_v1  ;;  %v798_v57 = vmin.f32 %v538_v46, %v1764_v2 }
  0x57   : > { %1031 = vst [vmem:[%s1790_s23 + $0x108] sm:$0xff] %v775_v50  ;;  %v282_v50 = vld [vmem:[%s1751_s4 + $0x1e0] sm:$0xff]  ;;  %v541_v55 = vmax.f32 %v281_v47, %v1762_v1  ;;  %v799_v60 = vmin.f32 %v539_v49, %v1764_v2 }
  0x58   : > { %1032 = vst [vmem:[%s1790_s23 + $0x110] sm:$0xff] %v776_v53  ;;  %v283_v53 = vld [vmem:[%s1751_s4 + $0x1e8] sm:$0xff]  ;;  %v542_v58 = vmax.f32 %v282_v50, %v1762_v1  ;;  %v800_v63 = vmin.f32 %v540_v52, %v1764_v2 }
  0x59   : > { %1033 = vst [vmem:[%s1790_s23 + $0x118] sm:$0xff] %v777_v56  ;;  %v284_v56 = vld [vmem:[%s1751_s4 + $0x1f0] sm:$0xff]  ;;  %v543_v61 = vmax.f32 %v283_v53, %v1762_v1  ;;  %v801_v4 = vmin.f32 %v541_v55, %v1764_v2 }
  0x5a   : > { %1034 = vst [vmem:[%s1790_s23 + $0x120] sm:$0xff] %v778_v59  ;;  %v285_v59 = vld [vmem:[%s1751_s4 + $0x1f8] sm:$0xff]  ;;  %v544_v0 = vmax.f32 %v284_v56, %v1762_v1  ;;  %v802_v7 = vmin.f32 %v542_v58, %v1764_v2 }
  0x5b   : > { %1035 = vst [vmem:[%s1790_s23 + $0x128] sm:$0xff] %v779_v62  ;;  %v286_v62 = vld [vmem:[%s1751_s4 + $0x200] sm:$0xff]  ;;  %v545_v5 = vmax.f32 %v285_v59, %v1762_v1  ;;  %v803_v10 = vmin.f32 %v543_v61, %v1764_v2 }
  0x5c   : > { %1036 = vst [vmem:[%s1790_s23 + $0x130] sm:$0xff] %v780_v3  ;;  %v287_v3 = vld [vmem:[%s1751_s4 + $0x208] sm:$0xff]  ;;  %v546_v8 = vmax.f32 %v286_v62, %v1762_v1  ;;  %v804_v13 = vmin.f32 %v544_v0, %v1764_v2 }
  0x5d   : > { %1037 = vst [vmem:[%s1790_s23 + $0x138] sm:$0xff] %v781_v6  ;;  %v288_v6 = vld [vmem:[%s1751_s4 + $0x210] sm:$0xff]  ;;  %v547_v11 = vmax.f32 %v287_v3, %v1762_v1  ;;  %v805_v16 = vmin.f32 %v545_v5, %v1764_v2 }
  0x5e   : > { %1038 = vst [vmem:[%s1790_s23 + $0x140] sm:$0xff] %v782_v9  ;;  %v289_v9 = vld [vmem:[%s1751_s4 + $0x218] sm:$0xff]  ;;  %v548_v14 = vmax.f32 %v288_v6, %v1762_v1  ;;  %v806_v19 = vmin.f32 %v546_v8, %v1764_v2 }
  0x5f   : > { %1039 = vst [vmem:[%s1790_s23 + $0x148] sm:$0xff] %v783_v12  ;;  %v290_v12 = vld [vmem:[%s1751_s4 + $0x220] sm:$0xff]  ;;  %v549_v17 = vmax.f32 %v289_v9, %v1762_v1  ;;  %v807_v22 = vmin.f32 %v547_v11, %v1764_v2 }
  0x60   : > { %1040 = vst [vmem:[%s1790_s23 + $0x150] sm:$0xff] %v784_v15  ;;  %v291_v15 = vld [vmem:[%s1751_s4 + $0x228] sm:$0xff]  ;;  %v550_v20 = vmax.f32 %v290_v12, %v1762_v1  ;;  %v808_v25 = vmin.f32 %v548_v14, %v1764_v2 }
  0x61   : > { %1041 = vst [vmem:[%s1790_s23 + $0x158] sm:$0xff] %v785_v18  ;;  %v292_v18 = vld [vmem:[%s1751_s4 + $0x230] sm:$0xff]  ;;  %v551_v23 = vmax.f32 %v291_v15, %v1762_v1  ;;  %v809_v28 = vmin.f32 %v549_v17, %v1764_v2 }
  0x62   : > { %1042 = vst [vmem:[%s1790_s23 + $0x160] sm:$0xff] %v786_v21  ;;  %v293_v21 = vld [vmem:[%s1751_s4 + $0x238] sm:$0xff]  ;;  %v552_v26 = vmax.f32 %v292_v18, %v1762_v1  ;;  %v810_v31 = vmin.f32 %v550_v20, %v1764_v2 }
  0x63   : > { %1043 = vst [vmem:[%s1790_s23 + $0x168] sm:$0xff] %v787_v24  ;;  %v294_v24 = vld [vmem:[%s1751_s4 + $0x240] sm:$0xff]  ;;  %v553_v29 = vmax.f32 %v293_v21, %v1762_v1  ;;  %v811_v34 = vmin.f32 %v551_v23, %v1764_v2 }
  0x64   : > { %1044 = vst [vmem:[%s1790_s23 + $0x170] sm:$0xff] %v788_v27  ;;  %v295_v27 = vld [vmem:[%s1751_s4 + $0x248] sm:$0xff]  ;;  %v554_v32 = vmax.f32 %v294_v24, %v1762_v1  ;;  %v812_v37 = vmin.f32 %v552_v26, %v1764_v2 }
  0x65   : > { %1045 = vst [vmem:[%s1790_s23 + $0x178] sm:$0xff] %v789_v30  ;;  %v296_v30 = vld [vmem:[%s1751_s4 + $0x250] sm:$0xff]  ;;  %v555_v35 = vmax.f32 %v295_v27, %v1762_v1  ;;  %v813_v40 = vmin.f32 %v553_v29, %v1764_v2 }
  0x66   : > { %1046 = vst [vmem:[%s1790_s23 + $0x180] sm:$0xff] %v790_v33  ;;  %v297_v33 = vld [vmem:[%s1751_s4 + $0x258] sm:$0xff]  ;;  %v556_v38 = vmax.f32 %v296_v30, %v1762_v1  ;;  %v814_v43 = vmin.f32 %v554_v32, %v1764_v2 }
  0x67   : > { %1047 = vst [vmem:[%s1790_s23 + $0x188] sm:$0xff] %v791_v36  ;;  %v298_v36 = vld [vmem:[%s1751_s4 + $0x260] sm:$0xff]  ;;  %v557_v41 = vmax.f32 %v297_v33, %v1762_v1  ;;  %v815_v46 = vmin.f32 %v555_v35, %v1764_v2 }
  0x68   : > { %1048 = vst [vmem:[%s1790_s23 + $0x190] sm:$0xff] %v792_v39  ;;  %v299_v39 = vld [vmem:[%s1751_s4 + $0x268] sm:$0xff]  ;;  %v558_v44 = vmax.f32 %v298_v36, %v1762_v1  ;;  %v816_v49 = vmin.f32 %v556_v38, %v1764_v2 }
  0x69   : > { %1049 = vst [vmem:[%s1790_s23 + $0x198] sm:$0xff] %v793_v42  ;;  %v300_v42 = vld [vmem:[%s1751_s4 + $0x270] sm:$0xff]  ;;  %v559_v47 = vmax.f32 %v299_v39, %v1762_v1  ;;  %v817_v52 = vmin.f32 %v557_v41, %v1764_v2 }
  0x6a   : > { %1050 = vst [vmem:[%s1790_s23 + $0x1a0] sm:$0xff] %v794_v45  ;;  %v301_v45 = vld [vmem:[%s1751_s4 + $0x278] sm:$0xff]  ;;  %v560_v50 = vmax.f32 %v300_v42, %v1762_v1  ;;  %v818_v55 = vmin.f32 %v558_v44, %v1764_v2 }
  0x6b   : > { %1051 = vst [vmem:[%s1790_s23 + $0x1a8] sm:$0xff] %v795_v48  ;;  %v302_v48 = vld [vmem:[%s1751_s4 + $0x280] sm:$0xff]  ;;  %v561_v53 = vmax.f32 %v301_v45, %v1762_v1  ;;  %v819_v58 = vmin.f32 %v559_v47, %v1764_v2 }
  0x6c   : > { %1052 = vst [vmem:[%s1790_s23 + $0x1b0] sm:$0xff] %v796_v51  ;;  %v303_v51 = vld [vmem:[%s1751_s4 + $0x288] sm:$0xff]  ;;  %v562_v56 = vmax.f32 %v302_v48, %v1762_v1  ;;  %v820_v61 = vmin.f32 %v560_v50, %v1764_v2 }
  0x6d   : > { %1053 = vst [vmem:[%s1790_s23 + $0x1b8] sm:$0xff] %v797_v54  ;;  %v304_v54 = vld [vmem:[%s1751_s4 + $0x290] sm:$0xff]  ;;  %v563_v59 = vmax.f32 %v303_v51, %v1762_v1  ;;  %v821_v0 = vmin.f32 %v561_v53, %v1764_v2 }
  0x6e   : > { %1054 = vst [vmem:[%s1790_s23 + $0x1c0] sm:$0xff] %v798_v57  ;;  %v305_v57 = vld [vmem:[%s1751_s4 + $0x298] sm:$0xff]  ;;  %v564_v62 = vmax.f32 %v304_v54, %v1762_v1  ;;  %v822_v5 = vmin.f32 %v562_v56, %v1764_v2 }
  0x6f   : > { %1055 = vst [vmem:[%s1790_s23 + $0x1c8] sm:$0xff] %v799_v60  ;;  %v306_v60 = vld [vmem:[%s1751_s4 + $0x2a0] sm:$0xff]  ;;  %v565_v3 = vmax.f32 %v305_v57, %v1762_v1  ;;  %v823_v8 = vmin.f32 %v563_v59, %v1764_v2 }
  0x70   : > { %1056 = vst [vmem:[%s1790_s23 + $0x1d0] sm:$0xff] %v800_v63  ;;  %v307_v63 = vld [vmem:[%s1751_s4 + $0x2a8] sm:$0xff]  ;;  %v566_v6 = vmax.f32 %v306_v60, %v1762_v1  ;;  %v824_v11 = vmin.f32 %v564_v62, %v1764_v2 }
  0x71   : > { %1057 = vst [vmem:[%s1790_s23 + $0x1d8] sm:$0xff] %v801_v4  ;;  %v308_v4 = vld [vmem:[%s1751_s4 + $0x2b0] sm:$0xff]  ;;  %v567_v9 = vmax.f32 %v307_v63, %v1762_v1  ;;  %v825_v14 = vmin.f32 %v565_v3, %v1764_v2 }
  0x72   : > { %1058 = vst [vmem:[%s1790_s23 + $0x1e0] sm:$0xff] %v802_v7  ;;  %v309_v7 = vld [vmem:[%s1751_s4 + $0x2b8] sm:$0xff]  ;;  %v568_v12 = vmax.f32 %v308_v4, %v1762_v1  ;;  %v826_v17 = vmin.f32 %v566_v6, %v1764_v2 }
  0x73   : > { %1059 = vst [vmem:[%s1790_s23 + $0x1e8] sm:$0xff] %v803_v10  ;;  %v310_v10 = vld [vmem:[%s1751_s4 + $0x2c0] sm:$0xff]  ;;  %v569_v15 = vmax.f32 %v309_v7, %v1762_v1  ;;  %v827_v20 = vmin.f32 %v567_v9, %v1764_v2 }
  0x74   : > { %1060 = vst [vmem:[%s1790_s23 + $0x1f0] sm:$0xff] %v804_v13  ;;  %v311_v13 = vld [vmem:[%s1751_s4 + $0x2c8] sm:$0xff]  ;;  %v570_v18 = vmax.f32 %v310_v10, %v1762_v1  ;;  %v828_v23 = vmin.f32 %v568_v12, %v1764_v2 }
  0x75   : > { %1061 = vst [vmem:[%s1790_s23 + $0x1f8] sm:$0xff] %v805_v16  ;;  %v312_v16 = vld [vmem:[%s1751_s4 + $0x2d0] sm:$0xff]  ;;  %v571_v21 = vmax.f32 %v311_v13, %v1762_v1  ;;  %v829_v26 = vmin.f32 %v569_v15, %v1764_v2 }
  0x76   : > { %1062 = vst [vmem:[%s1790_s23 + $0x200] sm:$0xff] %v806_v19  ;;  %v313_v19 = vld [vmem:[%s1751_s4 + $0x2d8] sm:$0xff]  ;;  %v572_v24 = vmax.f32 %v312_v16, %v1762_v1  ;;  %v830_v29 = vmin.f32 %v570_v18, %v1764_v2 }
  0x77   : > { %1063 = vst [vmem:[%s1790_s23 + $0x208] sm:$0xff] %v807_v22  ;;  %v314_v22 = vld [vmem:[%s1751_s4 + $0x2e0] sm:$0xff]  ;;  %v573_v27 = vmax.f32 %v313_v19, %v1762_v1  ;;  %v831_v32 = vmin.f32 %v571_v21, %v1764_v2 }
  0x78   : > { %1064 = vst [vmem:[%s1790_s23 + $0x210] sm:$0xff] %v808_v25  ;;  %v315_v25 = vld [vmem:[%s1751_s4 + $0x2e8] sm:$0xff]  ;;  %v574_v30 = vmax.f32 %v314_v22, %v1762_v1  ;;  %v832_v35 = vmin.f32 %v572_v24, %v1764_v2 }
  0x79   : > { %1065 = vst [vmem:[%s1790_s23 + $0x218] sm:$0xff] %v809_v28  ;;  %v316_v28 = vld [vmem:[%s1751_s4 + $0x2f0] sm:$0xff]  ;;  %v575_v33 = vmax.f32 %v315_v25, %v1762_v1  ;;  %v833_v38 = vmin.f32 %v573_v27, %v1764_v2 }
  0x7a   : > { %1066 = vst [vmem:[%s1790_s23 + $0x220] sm:$0xff] %v810_v31  ;;  %v317_v31 = vld [vmem:[%s1751_s4 + $0x2f8] sm:$0xff]  ;;  %v576_v36 = vmax.f32 %v316_v28, %v1762_v1  ;;  %v834_v41 = vmin.f32 %v574_v30, %v1764_v2 }
  0x7b   : > { %1067 = vst [vmem:[%s1790_s23 + $0x228] sm:$0xff] %v811_v34  ;;  %v318_v34 = vld [vmem:[%s1751_s4 + $0x300] sm:$0xff]  ;;  %v577_v39 = vmax.f32 %v317_v31, %v1762_v1  ;;  %v835_v44 = vmin.f32 %v575_v33, %v1764_v2 }
  0x7c   : > { %1068 = vst [vmem:[%s1790_s23 + $0x230] sm:$0xff] %v812_v37  ;;  %v319_v37 = vld [vmem:[%s1751_s4 + $0x308] sm:$0xff]  ;;  %v578_v42 = vmax.f32 %v318_v34, %v1762_v1  ;;  %v836_v47 = vmin.f32 %v576_v36, %v1764_v2 }
  0x7d   : > { %1069 = vst [vmem:[%s1790_s23 + $0x238] sm:$0xff] %v813_v40  ;;  %v320_v40 = vld [vmem:[%s1751_s4 + $0x310] sm:$0xff]  ;;  %v579_v45 = vmax.f32 %v319_v37, %v1762_v1  ;;  %v837_v50 = vmin.f32 %v577_v39, %v1764_v2 }
  0x7e   : > { %1070 = vst [vmem:[%s1790_s23 + $0x240] sm:$0xff] %v814_v43  ;;  %v321_v43 = vld [vmem:[%s1751_s4 + $0x318] sm:$0xff]  ;;  %v580_v48 = vmax.f32 %v320_v40, %v1762_v1  ;;  %v838_v53 = vmin.f32 %v578_v42, %v1764_v2 }
  0x7f   : > { %1071 = vst [vmem:[%s1790_s23 + $0x248] sm:$0xff] %v815_v46  ;;  %v322_v46 = vld [vmem:[%s1751_s4 + $0x320] sm:$0xff]  ;;  %v581_v51 = vmax.f32 %v321_v43, %v1762_v1  ;;  %v839_v56 = vmin.f32 %v579_v45, %v1764_v2 }
  0x80   : > { %1072 = vst [vmem:[%s1790_s23 + $0x250] sm:$0xff] %v816_v49  ;;  %v323_v49 = vld [vmem:[%s1751_s4 + $0x328] sm:$0xff]  ;;  %v582_v54 = vmax.f32 %v322_v46, %v1762_v1  ;;  %v840_v59 = vmin.f32 %v580_v48, %v1764_v2 }
  0x81   : > { %1073 = vst [vmem:[%s1790_s23 + $0x258] sm:$0xff] %v817_v52  ;;  %v324_v52 = vld [vmem:[%s1751_s4 + $0x330] sm:$0xff]  ;;  %v583_v57 = vmax.f32 %v323_v49, %v1762_v1  ;;  %v841_v62 = vmin.f32 %v581_v51, %v1764_v2 }
  0x82   : > { %1074 = vst [vmem:[%s1790_s23 + $0x260] sm:$0xff] %v818_v55  ;;  %v325_v55 = vld [vmem:[%s1751_s4 + $0x338] sm:$0xff]  ;;  %v584_v60 = vmax.f32 %v324_v52, %v1762_v1  ;;  %v842_v3 = vmin.f32 %v582_v54, %v1764_v2 }
  0x83   : > { %1075 = vst [vmem:[%s1790_s23 + $0x268] sm:$0xff] %v819_v58  ;;  %v326_v58 = vld [vmem:[%s1751_s4 + $0x340] sm:$0xff]  ;;  %v585_v63 = vmax.f32 %v325_v55, %v1762_v1  ;;  %v843_v6 = vmin.f32 %v583_v57, %v1764_v2 }
  0x84   : > { %1076 = vst [vmem:[%s1790_s23 + $0x270] sm:$0xff] %v820_v61  ;;  %v327_v61 = vld [vmem:[%s1751_s4 + $0x348] sm:$0xff]  ;;  %v586_v4 = vmax.f32 %v326_v58, %v1762_v1  ;;  %v844_v9 = vmin.f32 %v584_v60, %v1764_v2 }
  0x85   : > { %1077 = vst [vmem:[%s1790_s23 + $0x278] sm:$0xff] %v821_v0  ;;  %v328_v0 = vld [vmem:[%s1751_s4 + $0x350] sm:$0xff]  ;;  %v587_v7 = vmax.f32 %v327_v61, %v1762_v1  ;;  %v845_v12 = vmin.f32 %v585_v63, %v1764_v2 }
  0x86   : > { %1078 = vst [vmem:[%s1790_s23 + $0x280] sm:$0xff] %v822_v5  ;;  %v329_v5 = vld [vmem:[%s1751_s4 + $0x358] sm:$0xff]  ;;  %v588_v10 = vmax.f32 %v328_v0, %v1762_v1  ;;  %v846_v15 = vmin.f32 %v586_v4, %v1764_v2 }
  0x87   : > { %1079 = vst [vmem:[%s1790_s23 + $0x288] sm:$0xff] %v823_v8  ;;  %v330_v8 = vld [vmem:[%s1751_s4 + $0x360] sm:$0xff]  ;;  %v589_v13 = vmax.f32 %v329_v5, %v1762_v1  ;;  %v847_v18 = vmin.f32 %v587_v7, %v1764_v2 }
  0x88   : > { %1080 = vst [vmem:[%s1790_s23 + $0x290] sm:$0xff] %v824_v11  ;;  %v331_v11 = vld [vmem:[%s1751_s4 + $0x368] sm:$0xff]  ;;  %v590_v16 = vmax.f32 %v330_v8, %v1762_v1  ;;  %v848_v21 = vmin.f32 %v588_v10, %v1764_v2 }
  0x89   : > { %1081 = vst [vmem:[%s1790_s23 + $0x298] sm:$0xff] %v825_v14  ;;  %v332_v14 = vld [vmem:[%s1751_s4 + $0x370] sm:$0xff]  ;;  %v591_v19 = vmax.f32 %v331_v11, %v1762_v1  ;;  %v849_v24 = vmin.f32 %v589_v13, %v1764_v2 }
  0x8a   : > { %1082 = vst [vmem:[%s1790_s23 + $0x2a0] sm:$0xff] %v826_v17  ;;  %v333_v17 = vld [vmem:[%s1751_s4 + $0x378] sm:$0xff]  ;;  %v592_v22 = vmax.f32 %v332_v14, %v1762_v1  ;;  %v850_v27 = vmin.f32 %v590_v16, %v1764_v2 }
  0x8b   : > { %1083 = vst [vmem:[%s1790_s23 + $0x2a8] sm:$0xff] %v827_v20  ;;  %v334_v20 = vld [vmem:[%s1751_s4 + $0x380] sm:$0xff]  ;;  %v593_v25 = vmax.f32 %v333_v17, %v1762_v1  ;;  %v851_v30 = vmin.f32 %v591_v19, %v1764_v2 }
  0x8c   : > { %1084 = vst [vmem:[%s1790_s23 + $0x2b0] sm:$0xff] %v828_v23  ;;  %v335_v23 = vld [vmem:[%s1751_s4 + $0x388] sm:$0xff]  ;;  %v594_v28 = vmax.f32 %v334_v20, %v1762_v1  ;;  %v852_v33 = vmin.f32 %v592_v22, %v1764_v2  ;;  %v2278_v17 = vld [vmem:[#allocation5] ss:$0 sm:$0xff]  ;;  %v2283_v20 = vld [vmem:[#allocation7] ss:$0 sm:$0xff] }
  0x8d   : > { %1085 = vst [vmem:[%s1790_s23 + $0x2b8] sm:$0xff] %v829_v26  ;;  %v336_v26 = vld [vmem:[%s1751_s4 + $0x390] sm:$0xff]  ;;  %v595_v31 = vmax.f32 %v335_v23, %v1762_v1  ;;  %v853_v36 = vmin.f32 %v593_v25, %v1764_v2  ;;  %v354_v19 = vld [vmem:[%s1751_s4 + $0x420] sm:$0xff]  ;;  %v355_v22 = vld [vmem:[%s1751_s4 + $0x428] sm:$0xff] }
  0x8e   : > { %1086 = vst [vmem:[%s1790_s23 + $0x2c0] sm:$0xff] %v830_v29  ;;  %v337_v29 = vld [vmem:[%s1751_s4 + $0x398] sm:$0xff]  ;;  %v596_v34 = vmax.f32 %v336_v26, %v1762_v1  ;;  %v854_v39 = vmin.f32 %v594_v28, %v1764_v2  ;;  %v614_v26 = vmax.f32 %v354_v19, %v2278_v17 }
  0x8f   : > { %1087 = vst [vmem:[%s1790_s23 + $0x2c8] sm:$0xff] %v831_v32  ;;  %v338_v32 = vld [vmem:[%s1751_s4 + $0x3a0] sm:$0xff]  ;;  %v597_v37 = vmax.f32 %v337_v29, %v1762_v1  ;;  %v855_v42 = vmin.f32 %v595_v31, %v1764_v2  ;;  %v615_v29 = vmax.f32 %v355_v22, %v2278_v17 }
  0x90   : > { %1088 = vst [vmem:[%s1790_s23 + $0x2d0] sm:$0xff] %v832_v35  ;;  %v339_v35 = vld [vmem:[%s1751_s4 + $0x3a8] sm:$0xff]  ;;  %v598_v40 = vmax.f32 %v338_v32, %v1762_v1  ;;  %v856_v45 = vmin.f32 %v596_v34, %v1764_v2 }
  0x91   : > { %1089 = vst [vmem:[%s1790_s23 + $0x2d8] sm:$0xff] %v833_v38  ;;  %v340_v38 = vld [vmem:[%s1751_s4 + $0x3b0] sm:$0xff]  ;;  %v599_v43 = vmax.f32 %v339_v35, %v1762_v1  ;;  %v857_v48 = vmin.f32 %v597_v37, %v1764_v2  ;;  %v874_v37 = vmin.f32 %v614_v26, %v2283_v20 }
  0x92   : > { %1090 = vst [vmem:[%s1790_s23 + $0x2e0] sm:$0xff] %v834_v41  ;;  %v341_v41 = vld [vmem:[%s1751_s4 + $0x3b8] sm:$0xff]  ;;  %v600_v46 = vmax.f32 %v340_v38, %v1762_v1  ;;  %v858_v51 = vmin.f32 %v598_v40, %v1764_v2  ;;  %v875_v40 = vmin.f32 %v615_v29, %v2283_v20 }
  0x93   : > { %1091 = vst [vmem:[%s1790_s23 + $0x2e8] sm:$0xff] %v835_v44  ;;  %v342_v44 = vld [vmem:[%s1751_s4 + $0x3c0] sm:$0xff]  ;;  %v601_v49 = vmax.f32 %v341_v41, %v1762_v1  ;;  %v859_v54 = vmin.f32 %v599_v43, %v1764_v2 }
  0x94   : > { %1092 = vst [vmem:[%s1790_s23 + $0x2f0] sm:$0xff] %v836_v47  ;;  %v343_v47 = vld [vmem:[%s1751_s4 + $0x3c8] sm:$0xff]  ;;  %v602_v52 = vmax.f32 %v342_v44, %v1762_v1  ;;  %v860_v57 = vmin.f32 %v600_v46, %v1764_v2 }
  0x95   : > { %1093 = vst [vmem:[%s1790_s23 + $0x2f8] sm:$0xff] %v837_v50  ;;  %v344_v50 = vld [vmem:[%s1751_s4 + $0x3d0] sm:$0xff]  ;;  %v603_v55 = vmax.f32 %v343_v47, %v1762_v1  ;;  %v861_v60 = vmin.f32 %v601_v49, %v1764_v2 }
  0x96   : > { %1094 = vst [vmem:[%s1790_s23 + $0x300] sm:$0xff] %v838_v53  ;;  %v345_v53 = vld [vmem:[%s1751_s4 + $0x3d8] sm:$0xff]  ;;  %v604_v58 = vmax.f32 %v344_v50, %v1762_v1  ;;  %v862_v63 = vmin.f32 %v602_v52, %v1764_v2 }
  0x97   : > { %1095 = vst [vmem:[%s1790_s23 + $0x308] sm:$0xff] %v839_v56  ;;  %v346_v56 = vld [vmem:[%s1751_s4 + $0x3e0] sm:$0xff]  ;;  %v605_v61 = vmax.f32 %v345_v53, %v1762_v1  ;;  %v863_v4 = vmin.f32 %v603_v55, %v1764_v2 }
  0x98   : > { %1096 = vst [vmem:[%s1790_s23 + $0x310] sm:$0xff] %v840_v59  ;;  %v347_v59 = vld [vmem:[%s1751_s4 + $0x3e8] sm:$0xff]  ;;  %v606_v0 = vmax.f32 %v346_v56, %v1762_v1  ;;  %v864_v7 = vmin.f32 %v604_v58, %v1764_v2 }
  0x99   : > { %1097 = vst [vmem:[%s1790_s23 + $0x318] sm:$0xff] %v841_v62  ;;  %v348_v62 = vld [vmem:[%s1751_s4 + $0x3f0] sm:$0xff]  ;;  %v607_v5 = vmax.f32 %v347_v59, %v1762_v1  ;;  %v865_v10 = vmin.f32 %v605_v61, %v1764_v2 }
  0x9a   : > { %1098 = vst [vmem:[%s1790_s23 + $0x320] sm:$0xff] %v842_v3  ;;  %v349_v3 = vld [vmem:[%s1751_s4 + $0x3f8] sm:$0xff]  ;;  %v608_v8 = vmax.f32 %v348_v62, %v1762_v1  ;;  %v866_v13 = vmin.f32 %v606_v0, %v1764_v2 }
  0x9b   : > { %1099 = vst [vmem:[%s1790_s23 + $0x328] sm:$0xff] %v843_v6  ;;  %v350_v6 = vld [vmem:[%s1751_s4 + $0x400] sm:$0xff]  ;;  %v609_v11 = vmax.f32 %v349_v3, %v1762_v1  ;;  %v867_v16 = vmin.f32 %v607_v5, %v1764_v2 }
  0x9c   : > { %1100 = vst [vmem:[%s1790_s23 + $0x330] sm:$0xff] %v844_v9  ;;  %v351_v9 = vld [vmem:[%s1751_s4 + $0x408] sm:$0xff]  ;;  %v610_v14 = vmax.f32 %v350_v6, %v1762_v1 }
  0x9d   : > { %1101 = vst [vmem:[%s1790_s23 + $0x338] sm:$0xff] %v845_v12  ;;  %v352_v12 = vld [vmem:[%s1751_s4 + $0x410] sm:$0xff]  ;;  %v869_v2 = vmin.f32 %v609_v11, %v2283_v20 }
  0x9e   : > { %1102 = vst [vmem:[%s1790_s23 + $0x340] sm:$0xff] %v846_v15  ;;  %v353_v15 = vld [vmem:[%s1751_s4 + $0x418] sm:$0xff]  ;;  %v612_v1 = vmax.f32 %v352_v12, %v2278_v17  ;;  %v870_v25 = vmin.f32 %v610_v14, %v2283_v20 }
  0x9f   : > { %1103 = vst [vmem:[%s1790_s23 + $0x348] sm:$0xff] %v847_v18  ;;  %v611_v18 = vmax.f32 %v351_v9, %v2278_v17  ;;  %v613_v23 = vmax.f32 %v353_v15, %v2278_v17 }
  0xa0   : > { %1104 = vst [vmem:[%s1790_s23 + $0x350] sm:$0xff] %v848_v21  ;;  %v868_v21 = vmin.f32 %v608_v8, %v2283_v20  ;;  %v872_v31 = vmin.f32 %v612_v1, %v2283_v20 }
  0xa1   : > { %1105 = vst [vmem:[%s1790_s23 + $0x358] sm:$0xff] %v849_v24  ;;  %v356_v24 = vld [vmem:[%s1751_s4 + $0x430] sm:$0xff]  ;;  %v871_v28 = vmin.f32 %v611_v18, %v2283_v20  ;;  %v873_v34 = vmin.f32 %v613_v23, %v2283_v20 }
  0xa2   : > { %1106 = vst [vmem:[%s1790_s23 + $0x360] sm:$0xff] %v850_v27  ;;  %v357_v27 = vld [vmem:[%s1751_s4 + $0x438] sm:$0xff]  ;;  %v616_v32 = vmax.f32 %v356_v24, %v2278_v17 }
  0xa3   : > { %1107 = vst [vmem:[%s1790_s23 + $0x368] sm:$0xff] %v851_v30  ;;  %v358_v30 = vld [vmem:[%s1751_s4 + $0x440] sm:$0xff]  ;;  %v617_v35 = vmax.f32 %v357_v27, %v2278_v17 }
  0xa4   : > { %1108 = vst [vmem:[%s1790_s23 + $0x370] sm:$0xff] %v852_v33  ;;  %v359_v33 = vld [vmem:[%s1751_s4 + $0x448] sm:$0xff]  ;;  %v618_v38 = vmax.f32 %v358_v30, %v2278_v17  ;;  %v876_v43 = vmin.f32 %v616_v32, %v2283_v20 }
  0xa5   : > { %1109 = vst [vmem:[%s1790_s23 + $0x378] sm:$0xff] %v853_v36  ;;  %v360_v36 = vld [vmem:[%s1751_s4 + $0x450] sm:$0xff]  ;;  %v619_v41 = vmax.f32 %v359_v33, %v2278_v17  ;;  %v877_v46 = vmin.f32 %v617_v35, %v2283_v20 }
  0xa6   : > { %1110 = vst [vmem:[%s1790_s23 + $0x380] sm:$0xff] %v854_v39  ;;  %v361_v39 = vld [vmem:[%s1751_s4 + $0x458] sm:$0xff]  ;;  %v620_v44 = vmax.f32 %v360_v36, %v2278_v17  ;;  %v878_v49 = vmin.f32 %v618_v38, %v2283_v20 }
  0xa7   : > { %1111 = vst [vmem:[%s1790_s23 + $0x388] sm:$0xff] %v855_v42  ;;  %v362_v42 = vld [vmem:[%s1751_s4 + $0x460] sm:$0xff]  ;;  %v621_v47 = vmax.f32 %v361_v39, %v2278_v17  ;;  %v879_v52 = vmin.f32 %v619_v41, %v2283_v20 }
  0xa8   : > { %1112 = vst [vmem:[%s1790_s23 + $0x390] sm:$0xff] %v856_v45  ;;  %v363_v45 = vld [vmem:[%s1751_s4 + $0x468] sm:$0xff]  ;;  %v622_v50 = vmax.f32 %v362_v42, %v2278_v17  ;;  %v880_v55 = vmin.f32 %v620_v44, %v2283_v20 }
  0xa9   : > { %1113 = vst [vmem:[%s1790_s23 + $0x398] sm:$0xff] %v857_v48  ;;  %v364_v48 = vld [vmem:[%s1751_s4 + $0x470] sm:$0xff]  ;;  %v623_v53 = vmax.f32 %v363_v45, %v2278_v17  ;;  %v881_v58 = vmin.f32 %v621_v47, %v2283_v20 }
  0xaa   : > { %1114 = vst [vmem:[%s1790_s23 + $0x3a0] sm:$0xff] %v858_v51  ;;  %v365_v51 = vld [vmem:[%s1751_s4 + $0x478] sm:$0xff]  ;;  %v624_v56 = vmax.f32 %v364_v48, %v2278_v17  ;;  %v882_v61 = vmin.f32 %v622_v50, %v2283_v20 }
  0xab   : > { %1115 = vst [vmem:[%s1790_s23 + $0x3a8] sm:$0xff] %v859_v54  ;;  %v366_v54 = vld [vmem:[%s1751_s4 + $0x480] sm:$0xff]  ;;  %v625_v59 = vmax.f32 %v365_v51, %v2278_v17  ;;  %v883_v0 = vmin.f32 %v623_v53, %v2283_v20 }
  0xac   : > { %1116 = vst [vmem:[%s1790_s23 + $0x3b0] sm:$0xff] %v860_v57  ;;  %v367_v57 = vld [vmem:[%s1751_s4 + $0x488] sm:$0xff]  ;;  %v626_v62 = vmax.f32 %v366_v54, %v2278_v17  ;;  %v884_v5 = vmin.f32 %v624_v56, %v2283_v20 }
  0xad   : > { %1117 = vst [vmem:[%s1790_s23 + $0x3b8] sm:$0xff] %v861_v60  ;;  %v368_v60 = vld [vmem:[%s1751_s4 + $0x490] sm:$0xff]  ;;  %v627_v3 = vmax.f32 %v367_v57, %v2278_v17  ;;  %v885_v8 = vmin.f32 %v625_v59, %v2283_v20 }
  0xae   : > { %1118 = vst [vmem:[%s1790_s23 + $0x3c0] sm:$0xff] %v862_v63  ;;  %v369_v63 = vld [vmem:[%s1751_s4 + $0x498] sm:$0xff]  ;;  %v628_v6 = vmax.f32 %v368_v60, %v2278_v17  ;;  %v886_v11 = vmin.f32 %v626_v62, %v2283_v20 }
  0xaf   : > { %1119 = vst [vmem:[%s1790_s23 + $0x3c8] sm:$0xff] %v863_v4  ;;  %v370_v4 = vld [vmem:[%s1751_s4 + $0x4a0] sm:$0xff]  ;;  %v629_v9 = vmax.f32 %v369_v63, %v2278_v17  ;;  %v887_v14 = vmin.f32 %v627_v3, %v2283_v20 }
  0xb0   : > { %1120 = vst [vmem:[%s1790_s23 + $0x3d0] sm:$0xff] %v864_v7  ;;  %v371_v7 = vld [vmem:[%s1751_s4 + $0x4a8] sm:$0xff]  ;;  %v630_v12 = vmax.f32 %v370_v4, %v2278_v17  ;;  %v888_v18 = vmin.f32 %v628_v6, %v2283_v20 }
  0xb1   : > { %1121 = vst [vmem:[%s1790_s23 + $0x3d8] sm:$0xff] %v865_v10  ;;  %v372_v10 = vld [vmem:[%s1751_s4 + $0x4b0] sm:$0xff]  ;;  %v631_v15 = vmax.f32 %v371_v7, %v2278_v17  ;;  %v889_v1 = vmin.f32 %v629_v9, %v2283_v20 }
  0xb2   : > { %1122 = vst [vmem:[%s1790_s23 + $0x3e0] sm:$0xff] %v866_v13  ;;  %v373_v13 = vld [vmem:[%s1751_s4 + $0x4b8] sm:$0xff]  ;;  %v632_v19 = vmax.f32 %v372_v10, %v2278_v17  ;;  %v890_v23 = vmin.f32 %v630_v12, %v2283_v20 }
  0xb3   : > { %1123 = vst [vmem:[%s1790_s23 + $0x3e8] sm:$0xff] %v867_v16  ;;  %v374_v16 = vld [vmem:[%s1751_s4 + $0x4c0] sm:$0xff]  ;;  %v633_v22 = vmax.f32 %v373_v13, %v2278_v17  ;;  %v891_v26 = vmin.f32 %v631_v15, %v2283_v20 }
  0xb4   : > { %1124 = vst [vmem:[%s1790_s23 + $0x3f0] sm:$0xff] %v868_v21  ;;  %v375_v21 = vld [vmem:[%s1751_s4 + $0x4c8] sm:$0xff]  ;;  %v634_v24 = vmax.f32 %v374_v16, %v2278_v17  ;;  %v892_v29 = vmin.f32 %v632_v19, %v2283_v20 }
  0xb5   : > { %1125 = vst [vmem:[%s1790_s23 + $0x3f8] sm:$0xff] %v869_v2  ;;  %v376_v2 = vld [vmem:[%s1751_s4 + $0x4d0] sm:$0xff]  ;;  %v635_v27 = vmax.f32 %v375_v21, %v2278_v17  ;;  %v893_v32 = vmin.f32 %v633_v22, %v2283_v20 }
  0xb6   : > { %1126 = vst [vmem:[%s1790_s23 + $0x400] sm:$0xff] %v870_v25  ;;  %v377_v25 = vld [vmem:[%s1751_s4 + $0x4d8] sm:$0xff]  ;;  %v636_v30 = vmax.f32 %v376_v2, %v2278_v17  ;;  %v894_v35 = vmin.f32 %v634_v24, %v2283_v20 }
  0xb7   : > { %1127 = vst [vmem:[%s1790_s23 + $0x408] sm:$0xff] %v871_v28  ;;  %v378_v28 = vld [vmem:[%s1751_s4 + $0x4e0] sm:$0xff]  ;;  %v637_v33 = vmax.f32 %v377_v25, %v2278_v17  ;;  %v895_v38 = vmin.f32 %v635_v27, %v2283_v20 }
  0xb8   : > { %1128 = vst [vmem:[%s1790_s23 + $0x410] sm:$0xff] %v872_v31  ;;  %v379_v31 = vld [vmem:[%s1751_s4 + $0x4e8] sm:$0xff]  ;;  %v638_v36 = vmax.f32 %v378_v28, %v2278_v17  ;;  %v896_v41 = vmin.f32 %v636_v30, %v2283_v20 }
  0xb9   : > { %1129 = vst [vmem:[%s1790_s23 + $0x418] sm:$0xff] %v873_v34  ;;  %v380_v34 = vld [vmem:[%s1751_s4 + $0x4f0] sm:$0xff]  ;;  %v639_v39 = vmax.f32 %v379_v31, %v2278_v17  ;;  %v897_v44 = vmin.f32 %v637_v33, %v2283_v20 }
  0xba   : > { %1130 = vst [vmem:[%s1790_s23 + $0x420] sm:$0xff] %v874_v37  ;;  %v381_v37 = vld [vmem:[%s1751_s4 + $0x4f8] sm:$0xff]  ;;  %v640_v42 = vmax.f32 %v380_v34, %v2278_v17  ;;  %v898_v47 = vmin.f32 %v638_v36, %v2283_v20 }
  0xbb   : > { %1131 = vst [vmem:[%s1790_s23 + $0x428] sm:$0xff] %v875_v40  ;;  %v382_v40 = vld [vmem:[%s1751_s4 + $0x500] sm:$0xff]  ;;  %v641_v45 = vmax.f32 %v381_v37, %v2278_v17  ;;  %v899_v50 = vmin.f32 %v639_v39, %v2283_v20 }
  0xbc   : > { %1132 = vst [vmem:[%s1790_s23 + $0x430] sm:$0xff] %v876_v43  ;;  %v383_v43 = vld [vmem:[%s1751_s4 + $0x508] sm:$0xff]  ;;  %v642_v48 = vmax.f32 %v382_v40, %v2278_v17  ;;  %v900_v53 = vmin.f32 %v640_v42, %v2283_v20 }
  0xbd   : > { %1133 = vst [vmem:[%s1790_s23 + $0x438] sm:$0xff] %v877_v46  ;;  %v384_v46 = vld [vmem:[%s1751_s4 + $0x510] sm:$0xff]  ;;  %v643_v51 = vmax.f32 %v383_v43, %v2278_v17  ;;  %v901_v56 = vmin.f32 %v641_v45, %v2283_v20 }
  0xbe   : > { %1134 = vst [vmem:[%s1790_s23 + $0x440] sm:$0xff] %v878_v49  ;;  %v385_v49 = vld [vmem:[%s1751_s4 + $0x518] sm:$0xff]  ;;  %v644_v54 = vmax.f32 %v384_v46, %v2278_v17  ;;  %v902_v59 = vmin.f32 %v642_v48, %v2283_v20 }
  0xbf   : > { %1135 = vst [vmem:[%s1790_s23 + $0x448] sm:$0xff] %v879_v52  ;;  %v386_v52 = vld [vmem:[%s1751_s4 + $0x520] sm:$0xff]  ;;  %v645_v57 = vmax.f32 %v385_v49, %v2278_v17  ;;  %v903_v62 = vmin.f32 %v643_v51, %v2283_v20 }
  0xc0   : > { %1136 = vst [vmem:[%s1790_s23 + $0x450] sm:$0xff] %v880_v55  ;;  %v387_v55 = vld [vmem:[%s1751_s4 + $0x528] sm:$0xff]  ;;  %v646_v60 = vmax.f32 %v386_v52, %v2278_v17  ;;  %v904_v3 = vmin.f32 %v644_v54, %v2283_v20 }
  0xc1   : > { %1137 = vst [vmem:[%s1790_s23 + $0x458] sm:$0xff] %v881_v58  ;;  %v388_v58 = vld [vmem:[%s1751_s4 + $0x530] sm:$0xff]  ;;  %v647_v63 = vmax.f32 %v387_v55, %v2278_v17  ;;  %v905_v6 = vmin.f32 %v645_v57, %v2283_v20 }
  0xc2   : > { %1138 = vst [vmem:[%s1790_s23 + $0x460] sm:$0xff] %v882_v61  ;;  %v389_v61 = vld [vmem:[%s1751_s4 + $0x538] sm:$0xff]  ;;  %v648_v4 = vmax.f32 %v388_v58, %v2278_v17  ;;  %v906_v9 = vmin.f32 %v646_v60, %v2283_v20 }
  0xc3   : > { %1139 = vst [vmem:[%s1790_s23 + $0x468] sm:$0xff] %v883_v0  ;;  %v390_v0 = vld [vmem:[%s1751_s4 + $0x540] sm:$0xff]  ;;  %v649_v7 = vmax.f32 %v389_v61, %v2278_v17  ;;  %v907_v12 = vmin.f32 %v647_v63, %v2283_v20 }
  0xc4   : > { %1140 = vst [vmem:[%s1790_s23 + $0x470] sm:$0xff] %v884_v5  ;;  %v391_v5 = vld [vmem:[%s1751_s4 + $0x548] sm:$0xff]  ;;  %v650_v10 = vmax.f32 %v390_v0, %v2278_v17  ;;  %v908_v15 = vmin.f32 %v648_v4, %v2283_v20 }
  0xc5   : > { %1141 = vst [vmem:[%s1790_s23 + $0x478] sm:$0xff] %v885_v8  ;;  %v392_v8 = vld [vmem:[%s1751_s4 + $0x550] sm:$0xff]  ;;  %v651_v13 = vmax.f32 %v391_v5, %v2278_v17  ;;  %v909_v19 = vmin.f32 %v649_v7, %v2283_v20 }
  0xc6   : > { %1142 = vst [vmem:[%s1790_s23 + $0x480] sm:$0xff] %v886_v11  ;;  %v393_v11 = vld [vmem:[%s1751_s4 + $0x558] sm:$0xff]  ;;  %v652_v16 = vmax.f32 %v392_v8, %v2278_v17  ;;  %v910_v22 = vmin.f32 %v650_v10, %v2283_v20 }
  0xc7   : > { %1143 = vst [vmem:[%s1790_s23 + $0x488] sm:$0xff] %v887_v14  ;;  %v394_v14 = vld [vmem:[%s1751_s4 + $0x560] sm:$0xff]  ;;  %v653_v21 = vmax.f32 %v393_v11, %v2278_v17  ;;  %v911_v24 = vmin.f32 %v651_v13, %v2283_v20 }
  0xc8   : > { %1144 = vst [vmem:[%s1790_s23 + $0x490] sm:$0xff] %v888_v18  ;;  %v395_v18 = vld [vmem:[%s1751_s4 + $0x568] sm:$0xff]  ;;  %v654_v2 = vmax.f32 %v394_v14, %v2278_v17  ;;  %v912_v27 = vmin.f32 %v652_v16, %v2283_v20 }
  0xc9   : > { %1145 = vst [vmem:[%s1790_s23 + $0x498] sm:$0xff] %v889_v1  ;;  %v396_v1 = vld [vmem:[%s1751_s4 + $0x570] sm:$0xff]  ;;  %v655_v25 = vmax.f32 %v395_v18, %v2278_v17  ;;  %v913_v30 = vmin.f32 %v653_v21, %v2283_v20 }
  0xca   : > { %1146 = vst [vmem:[%s1790_s23 + $0x4a0] sm:$0xff] %v890_v23  ;;  %v397_v23 = vld [vmem:[%s1751_s4 + $0x578] sm:$0xff]  ;;  %v656_v28 = vmax.f32 %v396_v1, %v2278_v17  ;;  %v914_v33 = vmin.f32 %v654_v2, %v2283_v20 }
  0xcb   : > { %1147 = vst [vmem:[%s1790_s23 + $0x4a8] sm:$0xff] %v891_v26  ;;  %v398_v26 = vld [vmem:[%s1751_s4 + $0x580] sm:$0xff]  ;;  %v657_v31 = vmax.f32 %v397_v23, %v2278_v17  ;;  %v915_v36 = vmin.f32 %v655_v25, %v2283_v20 }
  0xcc   : > { %1148 = vst [vmem:[%s1790_s23 + $0x4b0] sm:$0xff] %v892_v29  ;;  %v399_v29 = vld [vmem:[%s1751_s4 + $0x588] sm:$0xff]  ;;  %v658_v34 = vmax.f32 %v398_v26, %v2278_v17  ;;  %v916_v39 = vmin.f32 %v656_v28, %v2283_v20 }
  0xcd   : > { %1149 = vst [vmem:[%s1790_s23 + $0x4b8] sm:$0xff] %v893_v32  ;;  %v400_v32 = vld [vmem:[%s1751_s4 + $0x590] sm:$0xff]  ;;  %v659_v37 = vmax.f32 %v399_v29, %v2278_v17  ;;  %v917_v42 = vmin.f32 %v657_v31, %v2283_v20 }
  0xce   : > { %1150 = vst [vmem:[%s1790_s23 + $0x4c0] sm:$0xff] %v894_v35  ;;  %v401_v35 = vld [vmem:[%s1751_s4 + $0x598] sm:$0xff]  ;;  %v660_v40 = vmax.f32 %v400_v32, %v2278_v17  ;;  %v918_v45 = vmin.f32 %v658_v34, %v2283_v20 }
  0xcf   : > { %1151 = vst [vmem:[%s1790_s23 + $0x4c8] sm:$0xff] %v895_v38  ;;  %v402_v38 = vld [vmem:[%s1751_s4 + $0x5a0] sm:$0xff]  ;;  %v661_v43 = vmax.f32 %v401_v35, %v2278_v17  ;;  %v919_v48 = vmin.f32 %v659_v37, %v2283_v20 }
  0xd0   : > { %1152 = vst [vmem:[%s1790_s23 + $0x4d0] sm:$0xff] %v896_v41  ;;  %v403_v41 = vld [vmem:[%s1751_s4 + $0x5a8] sm:$0xff]  ;;  %v662_v46 = vmax.f32 %v402_v38, %v2278_v17  ;;  %v920_v51 = vmin.f32 %v660_v40, %v2283_v20 }
  0xd1   : > { %1153 = vst [vmem:[%s1790_s23 + $0x4d8] sm:$0xff] %v897_v44  ;;  %v404_v44 = vld [vmem:[%s1751_s4 + $0x5b0] sm:$0xff]  ;;  %v663_v49 = vmax.f32 %v403_v41, %v2278_v17  ;;  %v921_v54 = vmin.f32 %v661_v43, %v2283_v20 }
  0xd2   : > { %1154 = vst [vmem:[%s1790_s23 + $0x4e0] sm:$0xff] %v898_v47  ;;  %v405_v47 = vld [vmem:[%s1751_s4 + $0x5b8] sm:$0xff]  ;;  %v664_v52 = vmax.f32 %v404_v44, %v2278_v17  ;;  %v922_v57 = vmin.f32 %v662_v46, %v2283_v20 }
  0xd3   : > { %1155 = vst [vmem:[%s1790_s23 + $0x4e8] sm:$0xff] %v899_v50  ;;  %v406_v50 = vld [vmem:[%s1751_s4 + $0x5c0] sm:$0xff]  ;;  %v665_v55 = vmax.f32 %v405_v47, %v2278_v17  ;;  %v923_v60 = vmin.f32 %v663_v49, %v2283_v20 }
  0xd4   : > { %1156 = vst [vmem:[%s1790_s23 + $0x4f0] sm:$0xff] %v900_v53  ;;  %v407_v53 = vld [vmem:[%s1751_s4 + $0x5c8] sm:$0xff]  ;;  %v666_v58 = vmax.f32 %v406_v50, %v2278_v17  ;;  %v924_v63 = vmin.f32 %v664_v52, %v2283_v20 }
  0xd5   : > { %1157 = vst [vmem:[%s1790_s23 + $0x4f8] sm:$0xff] %v901_v56  ;;  %v408_v56 = vld [vmem:[%s1751_s4 + $0x5d0] sm:$0xff]  ;;  %v667_v61 = vmax.f32 %v407_v53, %v2278_v17  ;;  %v925_v4 = vmin.f32 %v665_v55, %v2283_v20 }
  0xd6   : > { %1158 = vst [vmem:[%s1790_s23 + $0x500] sm:$0xff] %v902_v59  ;;  %v409_v59 = vld [vmem:[%s1751_s4 + $0x5d8] sm:$0xff]  ;;  %v668_v0 = vmax.f32 %v408_v56, %v2278_v17  ;;  %v926_v7 = vmin.f32 %v666_v58, %v2283_v20 }
  0xd7   : > { %1159 = vst [vmem:[%s1790_s23 + $0x508] sm:$0xff] %v903_v62  ;;  %v410_v62 = vld [vmem:[%s1751_s4 + $0x5e0] sm:$0xff]  ;;  %v669_v5 = vmax.f32 %v409_v59, %v2278_v17  ;;  %v927_v10 = vmin.f32 %v667_v61, %v2283_v20 }
  0xd8   : > { %1160 = vst [vmem:[%s1790_s23 + $0x510] sm:$0xff] %v904_v3  ;;  %v411_v3 = vld [vmem:[%s1751_s4 + $0x5e8] sm:$0xff]  ;;  %v670_v8 = vmax.f32 %v410_v62, %v2278_v17  ;;  %v928_v13 = vmin.f32 %v668_v0, %v2283_v20 }
  0xd9   : > { %1161 = vst [vmem:[%s1790_s23 + $0x518] sm:$0xff] %v905_v6  ;;  %v412_v6 = vld [vmem:[%s1751_s4 + $0x5f0] sm:$0xff]  ;;  %v671_v11 = vmax.f32 %v411_v3, %v2278_v17  ;;  %v929_v16 = vmin.f32 %v669_v5, %v2283_v20 }
  0xda   : > { %1162 = vst [vmem:[%s1790_s23 + $0x520] sm:$0xff] %v906_v9  ;;  %v413_v9 = vld [vmem:[%s1751_s4 + $0x5f8] sm:$0xff]  ;;  %v672_v14 = vmax.f32 %v412_v6, %v2278_v17  ;;  %v930_v21 = vmin.f32 %v670_v8, %v2283_v20 }
  0xdb   : > { %1163 = vst [vmem:[%s1790_s23 + $0x528] sm:$0xff] %v907_v12  ;;  %v414_v12 = vld [vmem:[%s1751_s4 + $0x600] sm:$0xff]  ;;  %v673_v18 = vmax.f32 %v413_v9, %v2278_v17  ;;  %v931_v2 = vmin.f32 %v671_v11, %v2283_v20 }
  0xdc   : > { %1164 = vst [vmem:[%s1790_s23 + $0x530] sm:$0xff] %v908_v15  ;;  %v415_v15 = vld [vmem:[%s1751_s4 + $0x608] sm:$0xff]  ;;  %v674_v1 = vmax.f32 %v414_v12, %v2278_v17  ;;  %v932_v25 = vmin.f32 %v672_v14, %v2283_v20 }
  0xdd   : > { %1165 = vst [vmem:[%s1790_s23 + $0x538] sm:$0xff] %v909_v19  ;;  %v416_v19 = vld [vmem:[%s1751_s4 + $0x610] sm:$0xff]  ;;  %v675_v23 = vmax.f32 %v415_v15, %v2278_v17  ;;  %v933_v28 = vmin.f32 %v673_v18, %v2283_v20 }
  0xde   : > { %1166 = vst [vmem:[%s1790_s23 + $0x540] sm:$0xff] %v910_v22  ;;  %v417_v22 = vld [vmem:[%s1751_s4 + $0x618] sm:$0xff]  ;;  %v676_v26 = vmax.f32 %v416_v19, %v2278_v17  ;;  %v934_v31 = vmin.f32 %v674_v1, %v2283_v20 }
  0xdf   : > { %1167 = vst [vmem:[%s1790_s23 + $0x548] sm:$0xff] %v911_v24  ;;  %v418_v24 = vld [vmem:[%s1751_s4 + $0x620] sm:$0xff]  ;;  %v677_v29 = vmax.f32 %v417_v22, %v2278_v17  ;;  %v935_v34 = vmin.f32 %v675_v23, %v2283_v20 }
  0xe0   : > { %1168 = vst [vmem:[%s1790_s23 + $0x550] sm:$0xff] %v912_v27  ;;  %v419_v27 = vld [vmem:[%s1751_s4 + $0x628] sm:$0xff]  ;;  %v678_v32 = vmax.f32 %v418_v24, %v2278_v17  ;;  %v936_v37 = vmin.f32 %v676_v26, %v2283_v20 }
  0xe1   : > { %1169 = vst [vmem:[%s1790_s23 + $0x558] sm:$0xff] %v913_v30  ;;  %v420_v30 = vld [vmem:[%s1751_s4 + $0x630] sm:$0xff]  ;;  %v679_v35 = vmax.f32 %v419_v27, %v2278_v17  ;;  %v937_v40 = vmin.f32 %v677_v29, %v2283_v20 }
  0xe2   : > { %1170 = vst [vmem:[%s1790_s23 + $0x560] sm:$0xff] %v914_v33  ;;  %v421_v33 = vld [vmem:[%s1751_s4 + $0x638] sm:$0xff]  ;;  %v680_v38 = vmax.f32 %v420_v30, %v2278_v17  ;;  %v938_v43 = vmin.f32 %v678_v32, %v2283_v20 }
  0xe3   : > { %1171 = vst [vmem:[%s1790_s23 + $0x568] sm:$0xff] %v915_v36  ;;  %v422_v36 = vld [vmem:[%s1751_s4 + $0x640] sm:$0xff]  ;;  %v681_v41 = vmax.f32 %v421_v33, %v2278_v17  ;;  %v939_v46 = vmin.f32 %v679_v35, %v2283_v20 }
  0xe4   : > { %1172 = vst [vmem:[%s1790_s23 + $0x570] sm:$0xff] %v916_v39  ;;  %v423_v39 = vld [vmem:[%s1751_s4 + $0x648] sm:$0xff]  ;;  %v682_v44 = vmax.f32 %v422_v36, %v2278_v17  ;;  %v940_v49 = vmin.f32 %v680_v38, %v2283_v20 }
  0xe5   : > { %1173 = vst [vmem:[%s1790_s23 + $0x578] sm:$0xff] %v917_v42  ;;  %v424_v42 = vld [vmem:[%s1751_s4 + $0x650] sm:$0xff]  ;;  %v683_v47 = vmax.f32 %v423_v39, %v2278_v17  ;;  %v941_v52 = vmin.f32 %v681_v41, %v2283_v20 }
  0xe6   : > { %1174 = vst [vmem:[%s1790_s23 + $0x580] sm:$0xff] %v918_v45  ;;  %v425_v45 = vld [vmem:[%s1751_s4 + $0x658] sm:$0xff]  ;;  %v684_v50 = vmax.f32 %v424_v42, %v2278_v17  ;;  %v942_v55 = vmin.f32 %v682_v44, %v2283_v20 }
  0xe7   : > { %1175 = vst [vmem:[%s1790_s23 + $0x588] sm:$0xff] %v919_v48  ;;  %v426_v48 = vld [vmem:[%s1751_s4 + $0x660] sm:$0xff]  ;;  %v685_v53 = vmax.f32 %v425_v45, %v2278_v17  ;;  %v943_v58 = vmin.f32 %v683_v47, %v2283_v20 }
  0xe8   : > { %1176 = vst [vmem:[%s1790_s23 + $0x590] sm:$0xff] %v920_v51  ;;  %v427_v51 = vld [vmem:[%s1751_s4 + $0x668] sm:$0xff]  ;;  %v686_v56 = vmax.f32 %v426_v48, %v2278_v17  ;;  %v944_v61 = vmin.f32 %v684_v50, %v2283_v20 }
  0xe9   : > { %1177 = vst [vmem:[%s1790_s23 + $0x598] sm:$0xff] %v921_v54  ;;  %v428_v54 = vld [vmem:[%s1751_s4 + $0x670] sm:$0xff]  ;;  %v687_v59 = vmax.f32 %v427_v51, %v2278_v17  ;;  %v945_v0 = vmin.f32 %v685_v53, %v2283_v20 }
  0xea   : > { %1178 = vst [vmem:[%s1790_s23 + $0x5a0] sm:$0xff] %v922_v57  ;;  %v429_v57 = vld [vmem:[%s1751_s4 + $0x678] sm:$0xff]  ;;  %v688_v62 = vmax.f32 %v428_v54, %v2278_v17  ;;  %v946_v5 = vmin.f32 %v686_v56, %v2283_v20 }
  0xeb   : > { %1179 = vst [vmem:[%s1790_s23 + $0x5a8] sm:$0xff] %v923_v60  ;;  %v430_v60 = vld [vmem:[%s1751_s4 + $0x680] sm:$0xff]  ;;  %v689_v3 = vmax.f32 %v429_v57, %v2278_v17  ;;  %v947_v8 = vmin.f32 %v687_v59, %v2283_v20 }
  0xec   : > { %1180 = vst [vmem:[%s1790_s23 + $0x5b0] sm:$0xff] %v924_v63  ;;  %v431_v63 = vld [vmem:[%s1751_s4 + $0x688] sm:$0xff]  ;;  %v690_v6 = vmax.f32 %v430_v60, %v2278_v17  ;;  %v948_v11 = vmin.f32 %v688_v62, %v2283_v20 }
  0xed   : > { %1181 = vst [vmem:[%s1790_s23 + $0x5b8] sm:$0xff] %v925_v4  ;;  %v432_v4 = vld [vmem:[%s1751_s4 + $0x690] sm:$0xff]  ;;  %v691_v9 = vmax.f32 %v431_v63, %v2278_v17  ;;  %v949_v14 = vmin.f32 %v689_v3, %v2283_v20 }
  0xee   : > { %1182 = vst [vmem:[%s1790_s23 + $0x5c0] sm:$0xff] %v926_v7  ;;  %v433_v7 = vld [vmem:[%s1751_s4 + $0x698] sm:$0xff]  ;;  %v692_v12 = vmax.f32 %v432_v4, %v2278_v17  ;;  %v950_v18 = vmin.f32 %v690_v6, %v2283_v20 }
  0xef   : > { %1183 = vst [vmem:[%s1790_s23 + $0x5c8] sm:$0xff] %v927_v10  ;;  %v434_v10 = vld [vmem:[%s1751_s4 + $0x6a0] sm:$0xff]  ;;  %v693_v15 = vmax.f32 %v433_v7, %v2278_v17  ;;  %v951_v1 = vmin.f32 %v691_v9, %v2283_v20 }
  0xf0   : > { %1184 = vst [vmem:[%s1790_s23 + $0x5d0] sm:$0xff] %v928_v13  ;;  %v435_v13 = vld [vmem:[%s1751_s4 + $0x6a8] sm:$0xff]  ;;  %v694_v19 = vmax.f32 %v434_v10, %v2278_v17  ;;  %v952_v23 = vmin.f32 %v692_v12, %v2283_v20 }
  0xf1   : > { %1185 = vst [vmem:[%s1790_s23 + $0x5d8] sm:$0xff] %v929_v16  ;;  %v436_v16 = vld [vmem:[%s1751_s4 + $0x6b0] sm:$0xff]  ;;  %v695_v22 = vmax.f32 %v435_v13, %v2278_v17  ;;  %v953_v26 = vmin.f32 %v693_v15, %v2283_v20 }
  0xf2   : > { %1186 = vst [vmem:[%s1790_s23 + $0x5e0] sm:$0xff] %v930_v21  ;;  %v437_v21 = vld [vmem:[%s1751_s4 + $0x6b8] sm:$0xff]  ;;  %v696_v24 = vmax.f32 %v436_v16, %v2278_v17  ;;  %v954_v29 = vmin.f32 %v694_v19, %v2283_v20 }
  0xf3   : > { %1187 = vst [vmem:[%s1790_s23 + $0x5e8] sm:$0xff] %v931_v2  ;;  %v438_v2 = vld [vmem:[%s1751_s4 + $0x6c0] sm:$0xff]  ;;  %v697_v27 = vmax.f32 %v437_v21, %v2278_v17  ;;  %v955_v32 = vmin.f32 %v695_v22, %v2283_v20 }
  0xf4   : > { %1188 = vst [vmem:[%s1790_s23 + $0x5f0] sm:$0xff] %v932_v25  ;;  %v439_v25 = vld [vmem:[%s1751_s4 + $0x6c8] sm:$0xff]  ;;  %v698_v30 = vmax.f32 %v438_v2, %v2278_v17  ;;  %v956_v35 = vmin.f32 %v696_v24, %v2283_v20 }
  0xf5   : > { %1189 = vst [vmem:[%s1790_s23 + $0x5f8] sm:$0xff] %v933_v28  ;;  %v440_v28 = vld [vmem:[%s1751_s4 + $0x6d0] sm:$0xff]  ;;  %v699_v33 = vmax.f32 %v439_v25, %v2278_v17  ;;  %v957_v38 = vmin.f32 %v697_v27, %v2283_v20 }
  0xf6   : > { %1190 = vst [vmem:[%s1790_s23 + $0x600] sm:$0xff] %v934_v31  ;;  %v441_v31 = vld [vmem:[%s1751_s4 + $0x6d8] sm:$0xff]  ;;  %v700_v36 = vmax.f32 %v440_v28, %v2278_v17  ;;  %v958_v41 = vmin.f32 %v698_v30, %v2283_v20 }
  0xf7   : > { %1191 = vst [vmem:[%s1790_s23 + $0x608] sm:$0xff] %v935_v34  ;;  %v442_v34 = vld [vmem:[%s1751_s4 + $0x6e0] sm:$0xff]  ;;  %v701_v39 = vmax.f32 %v441_v31, %v2278_v17  ;;  %v959_v44 = vmin.f32 %v699_v33, %v2283_v20 }
  0xf8   : > { %1192 = vst [vmem:[%s1790_s23 + $0x610] sm:$0xff] %v936_v37  ;;  %v443_v37 = vld [vmem:[%s1751_s4 + $0x6e8] sm:$0xff]  ;;  %v702_v42 = vmax.f32 %v442_v34, %v2278_v17  ;;  %v960_v47 = vmin.f32 %v700_v36, %v2283_v20 }
  0xf9   : > { %1193 = vst [vmem:[%s1790_s23 + $0x618] sm:$0xff] %v937_v40  ;;  %v444_v40 = vld [vmem:[%s1751_s4 + $0x6f0] sm:$0xff]  ;;  %v703_v45 = vmax.f32 %v443_v37, %v2278_v17  ;;  %v961_v50 = vmin.f32 %v701_v39, %v2283_v20 }
  0xfa   : > { %1194 = vst [vmem:[%s1790_s23 + $0x620] sm:$0xff] %v938_v43  ;;  %v445_v43 = vld [vmem:[%s1751_s4 + $0x6f8] sm:$0xff]  ;;  %v704_v48 = vmax.f32 %v444_v40, %v2278_v17  ;;  %v962_v53 = vmin.f32 %v702_v42, %v2283_v20 }
  0xfb   : > { %1195 = vst [vmem:[%s1790_s23 + $0x628] sm:$0xff] %v939_v46  ;;  %v446_v46 = vld [vmem:[%s1751_s4 + $0x700] sm:$0xff]  ;;  %v705_v51 = vmax.f32 %v445_v43, %v2278_v17  ;;  %v963_v56 = vmin.f32 %v703_v45, %v2283_v20 }
  0xfc   : > { %1196 = vst [vmem:[%s1790_s23 + $0x630] sm:$0xff] %v940_v49  ;;  %v447_v49 = vld [vmem:[%s1751_s4 + $0x708] sm:$0xff]  ;;  %v706_v54 = vmax.f32 %v446_v46, %v2278_v17  ;;  %v964_v59 = vmin.f32 %v704_v48, %v2283_v20 }
  0xfd   : > { %1197 = vst [vmem:[%s1790_s23 + $0x638] sm:$0xff] %v941_v52  ;;  %v448_v52 = vld [vmem:[%s1751_s4 + $0x710] sm:$0xff]  ;;  %v707_v57 = vmax.f32 %v447_v49, %v2278_v17  ;;  %v965_v62 = vmin.f32 %v705_v51, %v2283_v20 }
  0xfe   : > { %1198 = vst [vmem:[%s1790_s23 + $0x640] sm:$0xff] %v942_v55  ;;  %v449_v55 = vld [vmem:[%s1751_s4 + $0x718] sm:$0xff]  ;;  %v708_v60 = vmax.f32 %v448_v52, %v2278_v17  ;;  %v966_v3 = vmin.f32 %v706_v54, %v2283_v20 }
  0xff   : > { %1199 = vst [vmem:[%s1790_s23 + $0x648] sm:$0xff] %v943_v58  ;;  %v450_v58 = vld [vmem:[%s1751_s4 + $0x720] sm:$0xff]  ;;  %v709_v63 = vmax.f32 %v449_v55, %v2278_v17  ;;  %v967_v6 = vmin.f32 %v707_v57, %v2283_v20 }
 0x100   : > { %1200 = vst [vmem:[%s1790_s23 + $0x650] sm:$0xff] %v944_v61  ;;  %v451_v61 = vld [vmem:[%s1751_s4 + $0x728] sm:$0xff]  ;;  %v710_v4 = vmax.f32 %v450_v58, %v2278_v17  ;;  %v968_v9 = vmin.f32 %v708_v60, %v2283_v20 }
 0x101   : > { %1201 = vst [vmem:[%s1790_s23 + $0x658] sm:$0xff] %v945_v0  ;;  %v452_v0 = vld [vmem:[%s1751_s4 + $0x730] sm:$0xff]  ;;  %v711_v7 = vmax.f32 %v451_v61, %v2278_v17  ;;  %v969_v12 = vmin.f32 %v709_v63, %v2283_v20 }
 0x102   : > { %1202 = vst [vmem:[%s1790_s23 + $0x660] sm:$0xff] %v946_v5  ;;  %v453_v5 = vld [vmem:[%s1751_s4 + $0x738] sm:$0xff]  ;;  %v712_v10 = vmax.f32 %v452_v0, %v2278_v17  ;;  %v970_v15 = vmin.f32 %v710_v4, %v2283_v20 }
 0x103   : > { %1203 = vst [vmem:[%s1790_s23 + $0x668] sm:$0xff] %v947_v8  ;;  %v454_v8 = vld [vmem:[%s1751_s4 + $0x740] sm:$0xff]  ;;  %v713_v13 = vmax.f32 %v453_v5, %v2278_v17  ;;  %v971_v19 = vmin.f32 %v711_v7, %v2283_v20 }
 0x104   : > { %1204 = vst [vmem:[%s1790_s23 + $0x670] sm:$0xff] %v948_v11  ;;  %v455_v11 = vld [vmem:[%s1751_s4 + $0x748] sm:$0xff]  ;;  %v714_v16 = vmax.f32 %v454_v8, %v2278_v17  ;;  %v972_v22 = vmin.f32 %v712_v10, %v2283_v20 }
 0x105   : > { %1205 = vst [vmem:[%s1790_s23 + $0x678] sm:$0xff] %v949_v14  ;;  %v456_v14 = vld [vmem:[%s1751_s4 + $0x750] sm:$0xff]  ;;  %v715_v21 = vmax.f32 %v455_v11, %v2278_v17  ;;  %v973_v24 = vmin.f32 %v713_v13, %v2283_v20 }
 0x106   : > { %1206 = vst [vmem:[%s1790_s23 + $0x680] sm:$0xff] %v950_v18  ;;  %v457_v18 = vld [vmem:[%s1751_s4 + $0x758] sm:$0xff]  ;;  %v716_v2 = vmax.f32 %v456_v14, %v2278_v17  ;;  %v974_v27 = vmin.f32 %v714_v16, %v2283_v20 }
 0x107   : > { %1207 = vst [vmem:[%s1790_s23 + $0x688] sm:$0xff] %v951_v1  ;;  %v458_v1 = vld [vmem:[%s1751_s4 + $0x760] sm:$0xff]  ;;  %v717_v25 = vmax.f32 %v457_v18, %v2278_v17  ;;  %v975_v30 = vmin.f32 %v715_v21, %v2283_v20 }
 0x108   : > { %1208 = vst [vmem:[%s1790_s23 + $0x690] sm:$0xff] %v952_v23  ;;  %v459_v23 = vld [vmem:[%s1751_s4 + $0x768] sm:$0xff]  ;;  %v718_v28 = vmax.f32 %v458_v1, %v2278_v17  ;;  %v976_v33 = vmin.f32 %v716_v2, %v2283_v20 }
 0x109   : > { %1209 = vst [vmem:[%s1790_s23 + $0x698] sm:$0xff] %v953_v26  ;;  %v460_v26 = vld [vmem:[%s1751_s4 + $0x770] sm:$0xff]  ;;  %v719_v31 = vmax.f32 %v459_v23, %v2278_v17  ;;  %v977_v36 = vmin.f32 %v717_v25, %v2283_v20 }
 0x10a   : > { %1210 = vst [vmem:[%s1790_s23 + $0x6a0] sm:$0xff] %v954_v29  ;;  %v461_v29 = vld [vmem:[%s1751_s4 + $0x778] sm:$0xff]  ;;  %v720_v34 = vmax.f32 %v460_v26, %v2278_v17  ;;  %v978_v39 = vmin.f32 %v718_v28, %v2283_v20 }
 0x10b   : > { %1211 = vst [vmem:[%s1790_s23 + $0x6a8] sm:$0xff] %v955_v32  ;;  %v462_v32 = vld [vmem:[%s1751_s4 + $0x780] sm:$0xff]  ;;  %v721_v37 = vmax.f32 %v461_v29, %v2278_v17  ;;  %v979_v42 = vmin.f32 %v719_v31, %v2283_v20 }
 0x10c   : > { %1212 = vst [vmem:[%s1790_s23 + $0x6b0] sm:$0xff] %v956_v35  ;;  %v463_v35 = vld [vmem:[%s1751_s4 + $0x788] sm:$0xff]  ;;  %v722_v40 = vmax.f32 %v462_v32, %v2278_v17  ;;  %v980_v45 = vmin.f32 %v720_v34, %v2283_v20 }
 0x10d   : > { %1213 = vst [vmem:[%s1790_s23 + $0x6b8] sm:$0xff] %v957_v38  ;;  %v464_v38 = vld [vmem:[%s1751_s4 + $0x790] sm:$0xff]  ;;  %v723_v43 = vmax.f32 %v463_v35, %v2278_v17  ;;  %v981_v48 = vmin.f32 %v721_v37, %v2283_v20 }
 0x10e   : > { %1214 = vst [vmem:[%s1790_s23 + $0x6c0] sm:$0xff] %v958_v41  ;;  %v465_v41 = vld [vmem:[%s1751_s4 + $0x798] sm:$0xff]  ;;  %v724_v46 = vmax.f32 %v464_v38, %v2278_v17  ;;  %v982_v51 = vmin.f32 %v722_v40, %v2283_v20 }
 0x10f   : > { %1215 = vst [vmem:[%s1790_s23 + $0x6c8] sm:$0xff] %v959_v44  ;;  %v466_v44 = vld [vmem:[%s1751_s4 + $0x7a0] sm:$0xff]  ;;  %v725_v49 = vmax.f32 %v465_v41, %v2278_v17  ;;  %v983_v54 = vmin.f32 %v723_v43, %v2283_v20 }
 0x110   : > { %1216 = vst [vmem:[%s1790_s23 + $0x6d0] sm:$0xff] %v960_v47  ;;  %v467_v47 = vld [vmem:[%s1751_s4 + $0x7a8] sm:$0xff]  ;;  %v726_v52 = vmax.f32 %v466_v44, %v2278_v17  ;;  %v984_v57 = vmin.f32 %v724_v46, %v2283_v20 }
 0x111   : > { %1217 = vst [vmem:[%s1790_s23 + $0x6d8] sm:$0xff] %v961_v50  ;;  %v468_v50 = vld [vmem:[%s1751_s4 + $0x7b0] sm:$0xff]  ;;  %v727_v55 = vmax.f32 %v467_v47, %v2278_v17  ;;  %v985_v60 = vmin.f32 %v725_v49, %v2283_v20 }
 0x112   : > { %1218 = vst [vmem:[%s1790_s23 + $0x6e0] sm:$0xff] %v962_v53  ;;  %v469_v53 = vld [vmem:[%s1751_s4 + $0x7b8] sm:$0xff]  ;;  %v728_v58 = vmax.f32 %v468_v50, %v2278_v17  ;;  %v986_v63 = vmin.f32 %v726_v52, %v2283_v20 }
 0x113   : > { %1219 = vst [vmem:[%s1790_s23 + $0x6e8] sm:$0xff] %v963_v56  ;;  %v470_v56 = vld [vmem:[%s1751_s4 + $0x7c0] sm:$0xff]  ;;  %v729_v61 = vmax.f32 %v469_v53, %v2278_v17  ;;  %v987_v4 = vmin.f32 %v727_v55, %v2283_v20 }
 0x114   : > { %1220 = vst [vmem:[%s1790_s23 + $0x6f0] sm:$0xff] %v964_v59  ;;  %v471_v59 = vld [vmem:[%s1751_s4 + $0x7c8] sm:$0xff]  ;;  %v730_v0 = vmax.f32 %v470_v56, %v2278_v17  ;;  %v988_v7 = vmin.f32 %v728_v58, %v2283_v20 }
 0x115   : > { %1221 = vst [vmem:[%s1790_s23 + $0x6f8] sm:$0xff] %v965_v62  ;;  %v472_v62 = vld [vmem:[%s1751_s4 + $0x7d0] sm:$0xff]  ;;  %v731_v5 = vmax.f32 %v471_v59, %v2278_v17  ;;  %v989_v10 = vmin.f32 %v729_v61, %v2283_v20 }
 0x116   : > { %1222 = vst [vmem:[%s1790_s23 + $0x700] sm:$0xff] %v966_v3  ;;  %v473_v3 = vld [vmem:[%s1751_s4 + $0x7d8] sm:$0xff]  ;;  %v732_v8 = vmax.f32 %v472_v62, %v2278_v17  ;;  %v990_v13 = vmin.f32 %v730_v0, %v2283_v20 }
 0x117   : > { %1223 = vst [vmem:[%s1790_s23 + $0x708] sm:$0xff] %v967_v6  ;;  %v474_v6 = vld [vmem:[%s1751_s4 + $0x7e0] sm:$0xff]  ;;  %v733_v11 = vmax.f32 %v473_v3, %v2278_v17  ;;  %v991_v16 = vmin.f32 %v731_v5, %v2283_v20 }
 0x118   : > { %1224 = vst [vmem:[%s1790_s23 + $0x710] sm:$0xff] %v968_v9  ;;  %v475_v9 = vld [vmem:[%s1751_s4 + $0x7e8] sm:$0xff]  ;;  %v734_v14 = vmax.f32 %v474_v6, %v2278_v17 }
 0x119   : > { %1225 = vst [vmem:[%s1790_s23 + $0x718] sm:$0xff] %v969_v12  ;;  %v476_v12 = vld [vmem:[%s1751_s4 + $0x7f0] sm:$0xff]  ;;  %v735_v18 = vmax.f32 %v475_v9, %v2278_v17  ;;  %v993_v1 = vmin.f32 %v733_v11, %v2283_v20 }
 0x11a   : > { %1226 = vst [vmem:[%s1790_s23 + $0x720] sm:$0xff] %v970_v15  ;;  %v477_v15 = vld [vmem:[%s1751_s4 + $0x7f8] sm:$0xff]  ;;  %v736_v21 = vmax.f32 %v476_v12, %v2278_v17  ;;  %v994_v2 = vmin.f32 %v734_v14, %v2283_v20 }
 0x11b   : > { %1227 = vst [vmem:[%s1790_s23 + $0x728] sm:$0xff] %v971_v19  ;;  %v992_v19 = vmin.f32 %v732_v8, %v2283_v20  ;;  %v995_v23 = vmin.f32 %v735_v18, %v2283_v20 }
 0x11c   : > { %1228 = vst [vmem:[%s1790_s23 + $0x730] sm:$0xff] %v972_v22  ;;  %v737_v22 = vmax.f32 %v477_v15, %v2278_v17 }
 0x11d   : > { %1229 = vst [vmem:[%s1790_s23 + $0x738] sm:$0xff] %v973_v24  ;;  %v996_v24 = vmin.f32 %v736_v21, %v2283_v20 }
 0x11e   : > { %1230 = vst [vmem:[%s1790_s23 + $0x740] sm:$0xff] %v974_v27  ;;  %v997_v25 = vmin.f32 %v737_v22, %v2283_v20 }
 0x11f   : > { %1231 = vst [vmem:[%s1790_s23 + $0x748] sm:$0xff] %v975_v30 }
 0x120   : > { %1232 = vst [vmem:[%s1790_s23 + $0x750] sm:$0xff] %v976_v33 }
 0x121   : > { %1233 = vst [vmem:[%s1790_s23 + $0x758] sm:$0xff] %v977_v36 }
 0x122   : > { %1234 = vst [vmem:[%s1790_s23 + $0x760] sm:$0xff] %v978_v39 }
 0x123   : > { %1235 = vst [vmem:[%s1790_s23 + $0x768] sm:$0xff] %v979_v42 }
 0x124   : > { %1236 = vst [vmem:[%s1790_s23 + $0x770] sm:$0xff] %v980_v45 }
 0x125   : > { %1237 = vst [vmem:[%s1790_s23 + $0x778] sm:$0xff] %v981_v48 }
 0x126   : > { %1238 = vst [vmem:[%s1790_s23 + $0x780] sm:$0xff] %v982_v51 }
 0x127   : > { %1239 = vst [vmem:[%s1790_s23 + $0x788] sm:$0xff] %v983_v54 }
 0x128   : > { %1240 = vst [vmem:[%s1790_s23 + $0x790] sm:$0xff] %v984_v57 }
 0x129   : > { %1241 = vst [vmem:[%s1790_s23 + $0x798] sm:$0xff] %v985_v60 }
 0x12a   : > { %1242 = vst [vmem:[%s1790_s23 + $0x7a0] sm:$0xff] %v986_v63 }
 0x12b   : > { %1243 = vst [vmem:[%s1790_s23 + $0x7a8] sm:$0xff] %v987_v4 }
 0x12c   : > { %1244 = vst [vmem:[%s1790_s23 + $0x7b0] sm:$0xff] %v988_v7 }
 0x12d   : > { %1245 = vst [vmem:[%s1790_s23 + $0x7b8] sm:$0xff] %v989_v10 }
 0x12e   : > { %1246 = vst [vmem:[%s1790_s23 + $0x7c0] sm:$0xff] %v990_v13 }
 0x12f   : > { %1247 = vst [vmem:[%s1790_s23 + $0x7c8] sm:$0xff] %v991_v16 }
 0x130   : > { %1248 = vst [vmem:[%s1790_s23 + $0x7d0] sm:$0xff] %v992_v19 }
 0x131   : > { %1249 = vst [vmem:[%s1790_s23 + $0x7d8] sm:$0xff] %v993_v1 }
 0x132   : > { %1250 = vst [vmem:[%s1790_s23 + $0x7e0] sm:$0xff] %v994_v2 }
 0x133   : > { %1251 = vst [vmem:[%s1790_s23 + $0x7e8] sm:$0xff] %v995_v23 }
 0x134   : > { %1252 = vst [vmem:[%s1790_s23 + $0x7f0] sm:$0xff] %v996_v24 }
 0x135   : > { %1253 = vst [vmem:[%s1790_s23 + $0x7f8] sm:$0xff] %v997_v25 }
 0x136   : > { %1574 = shalt.err (!%p1571_p8)
}
 0x137   : > { %s1623_s27 = smov 128   ;;  %s1624_s28 = smov 8  }
 0x138   : > { %1392 = dma.vmem_to_hbm [thread:$0]  (%p1697_p11), %s1268_s29, 32768, %s1270_s22, %s1255_s6, %s1623_s27, %s1623_s27, %s1624_s28  }
 0x139 PF: > { %s1284_s30 = sand.u32 1, %s1605_s12   ;;  %p2841_p9 = scmp.ge.s32.totalorder %s1617_s15, 2 }
 0x13a   : > { %s1285_s4 = scalar_lea.sflag [#allocation4], %s1284_s30 }
 0x13b   : > { %p1406_p10 = pnand %p2841_p9, %p1701_p12 }
 0x13d   : > { %p1407_p1 = pneg %p1406_p10 }
 0x13f   : > { %1600 = dma.done.wait (%p1407_p1), %s1285_s4, 32768  }
 0x140   : > { %1602 = vsyncadd (%p1407_p1), %s1285_s4, 4294934528  ;;  %p17_p2 = scmp.ge.s32.totalorder %s1670_s18, 4   ;;  %s2842_s12 = smov %s1609_s13 }
 0x141   : > { %s2843_s13 = smov %s1613_s14  ;;  %s2844_s14 = smov %s1682_s21 }
 0x142   : > { %s2845_s15 = smov %s1670_s18  ;;  %19 = sbr.rel (!%p17_p2) target bundleno = 6 (0x6), region = 85 }
 0x147   :  { %1291 = vsyncpa [#allocation3], 1 }
 0x148   :  { %1293 = vsyncpa [#allocation3 + $0x1], 1 }
 0x149   :  { %1294 = vsyncpa [#allocation6], 1 }
 0x14a   :  { %1295 = vsyncpa [#allocation4], 1 }
 0x14b   :  { %1297 = vsyncpa [#allocation4 + $0x1], 1 }

</bundles_post_ra>
